<compile_context>
chip_gen: v5e
topology: v5e:2x2
jax: 0.10.0
libtpu: 0.0.40
codegen_flags: <defaults>
</compile_context>

<pallas_src>
import functools

import jax
import jax.numpy as jnp
import numpy as np
from jax import lax
from jax.experimental import pallas as pl
from jax.experimental.pallas import tpu as pltpu

NUM_GROUPS = 32
EPS = 1e-6
_MB = 1024 * 1024
_F32, _BF16 = 4, 2


def _vmem_capacity_bytes():
    try:
        cap = int(pltpu.get_tpu_info().vmem_capacity_bytes)
        return max(64 * _MB, min(cap, 128 * _MB))
    except Exception:
        return 64 * _MB  # conservative (v7x physical); safe on v5e/v6e too


_VMEM_CAP = _vmem_capacity_bytes()
# Scoped VMEM limit with headroom for compiler scratch / semaphores / double buffers:
#   v7x (64 MiB physical)  -> 48 MiB;   v5e/v6e (128 MiB) -> 96 MiB.
VMEM_LIMIT = (_VMEM_CAP * 3) // 4
# Budget used to gate the VMEM-resident (fused) variants vs the streaming fallbacks
# (~40 MiB on v7x, ~88 MiB on v5e/v6e).
FUSE_BUDGET = VMEM_LIMIT - 8 * _MB


def _pick_tile(n, max_tile):
    for t in (1024, 512, 256, 128):
        if t <= max_tile and n % t == 0:
            return t
    return n  # small / odd N: one full-extent tile


# ---------------------------------------------------------------------------
# Shared flash-attention (online softmax) inner step.
# ---------------------------------------------------------------------------
def _attn_step(q, kt, vt, m, l, acc):
    s = jnp.dot(q, kt, preferred_element_type=jnp.float32)          # [TQ, TK] f32
    m_new = jnp.maximum(m, jnp.max(s, axis=-1, keepdims=True))
    alpha = jnp.exp(m - m_new)
    p = jnp.exp(s - m_new)
    l_new = alpha * l + jnp.sum(p, axis=-1, keepdims=True)
    acc_new = alpha * acc + jnp.dot(p.astype(jnp.bfloat16), vt,
                                    preferred_element_type=jnp.float32)
    return m_new, l_new, acc_new


# ---------------------------------------------------------------------------
# Fused GroupNorm (stats + apply) + QKV projection: one grid step per batch,
# x slab resident in VMEM, so x is read from HBM exactly once.
# ---------------------------------------------------------------------------
def _gn_qkv_fused_kernel(x_ref, gmaskT_ref, gamma_ref, beta_ref,
                         wqkv_ref, bqkv_ref, q_ref, kT_ref, v_ref,
                         *, ts, cg, eps):
    n, c = x_ref.shape[1], x_ref.shape[2]
    nt = n // ts

    # ---- pass 1: per-channel sum / sum-of-squares over the resident slab ----
    sum_c = jnp.zeros((1, c), jnp.float32)
    sq_c = jnp.zeros((1, c), jnp.float32)
    for t in range(nt):
        xt = x_ref[0, pl.ds(t * ts, ts), :]                          # [TS, C] f32
        sum_c = sum_c + jnp.sum(xt, axis=0, keepdims=True)
        sq_c = sq_c + jnp.sum(xt * xt, axis=0, keepdims=True)

    # Group statistics (E[x^2]-E[x]^2 in f32; activations are ~zero-centered).
    # Masked VPU/XLU reductions instead of 1-row MXU matmuls.
    inv_cnt = 1.0 / float(n * cg)
    gmaskT = gmaskT_ref[...]                                         # [G, C] one-hot
    sum_g = jnp.sum(gmaskT * sum_c, axis=-1, keepdims=True)          # [G, 1]
    sq_g = jnp.sum(gmaskT * sq_c, axis=-1, keepdims=True)
    mean_g = sum_g * inv_cnt
    var_g = sq_g * inv_cnt - mean_g * mean_g
    inv_g = lax.rsqrt(var_g + eps)
    mean_ch = jnp.sum(gmaskT * mean_g, axis=0, keepdims=True)        # [1, C]
    inv_ch = jnp.sum(gmaskT * inv_g, axis=0, keepdims=True)
    scale_ch = inv_ch * gamma_ref[...]
    shift_ch = beta_ref[...] - mean_ch * scale_ch

    # ---- pass 2: GroupNorm apply + QKV projection, tile by tile -------------
    for t in range(nt):
        sl = pl.ds(t * ts, ts)
        hn = (x_ref[0, sl, :] * scale_ch + shift_ch).astype(jnp.bfloat16)
        q_t = jnp.dot(hn, wqkv_ref[0], preferred_element_type=jnp.float32) + bqkv_ref[0]
        k_t = jnp.dot(hn, wqkv_ref[1], preferred_element_type=jnp.float32) + bqkv_ref[1]
        v_t = jnp.dot(hn, wqkv_ref[2], preferred_element_type=jnp.float32) + bqkv_ref[2]
        q_ref[0, sl, :] = q_t.astype(jnp.bfloat16)
        kT_ref[0, :, sl] = k_t.T.astype(jnp.bfloat16)                # K stored pre-transposed
        v_ref[0, sl, :] = v_t.astype(jnp.bfloat16)


# ---------------------------------------------------------------------------
# Streaming fallback A: token-tiled GroupNorm statistics (per-channel sums).
# ---------------------------------------------------------------------------
def _gn_stats_kernel(x_ref, sum_ref, sq_ref):
    @pl.when(pl.program_id(1) == 0)
    def _():
        sum_ref[...] = jnp.zeros_like(sum_ref)
        sq_ref[...] = jnp.zeros_like(sq_ref)

    x = x_ref[0]                                                     # [TS, C] f32
    sum_ref[0] += jnp.sum(x, axis=0, keepdims=True)
    sq_ref[0] += jnp.sum(x * x, axis=0, keepdims=True)


# ---------------------------------------------------------------------------
# Streaming fallback B: token-tiled GroupNorm apply + QKV projection.
# ---------------------------------------------------------------------------
def _gn_qkv_kernel(x_ref, mean_ref, inv_ref, gamma_ref, beta_ref,
                   wqkv_ref, bqkv_ref, q_ref, kT_ref, v_ref):
    scale_ch = inv_ref[0] * gamma_ref[...]                           # [1, C]
    shift_ch = beta_ref[...] - mean_ref[0] * scale_ch
    hn = (x_ref[0] * scale_ch + shift_ch).astype(jnp.bfloat16)       # [TS, C]
    q_t = jnp.dot(hn, wqkv_ref[0], preferred_element_type=jnp.float32) + bqkv_ref[0]
    k_t = jnp.dot(hn, wqkv_ref[1], preferred_element_type=jnp.float32) + bqkv_ref[1]
    v_t = jnp.dot(hn, wqkv_ref[2], preferred_element_type=jnp.float32) + bqkv_ref[2]
    q_ref[0] = q_t.astype(jnp.bfloat16)
    kT_ref[0] = k_t.T.astype(jnp.bfloat16)
    v_ref[0] = v_t.astype(jnp.bfloat16)


# ---------------------------------------------------------------------------
# Attention + output projection + residual, K/V VMEM-resident per batch.
# K/V blocks are indexed by batch only -> fetched once per batch; key tiles are
# sliced in-kernel, so there is no per-q-tile K/V re-DMA from HBM.
# ---------------------------------------------------------------------------
def _attn_resident_kernel(x_ref, q_ref, kT_ref, v_ref, wo_ref, bo_ref, o_ref, *, tk):
    n = v_ref.shape[1]
    q = q_ref[0]                                                     # [TQ, C] bf16 (scale folded)
    tq, c = q.shape
    m = jnp.full((tq, 1), -jnp.inf, jnp.float32)
    l = jnp.zeros((tq, 1), jnp.float32)
    acc = jnp.zeros((tq, c), jnp.float32)
    for ki in range(n // tk):
        kt = kT_ref[0, :, pl.ds(ki * tk, tk)]                        # [C, TK] bf16
        vt = v_ref[0, pl.ds(ki * tk, tk), :]                         # [TK, C] bf16
        m, l, acc = _attn_step(q, kt, vt, m, l, acc)
    out = acc * pl.reciprocal(l, approx=True)
    proj = jnp.dot(out.astype(jnp.bfloat16), wo_ref[...],
                   preferred_element_type=jnp.float32) + bo_ref[...]
    o_ref[0] = x_ref[0] + proj                                       # residual in f32


# ---------------------------------------------------------------------------
# Streaming fallback C: flash attention over key tiles on the grid.
# ---------------------------------------------------------------------------
def _attn_streaming_kernel(x_ref, q_ref, kT_ref, v_ref, wo_ref, bo_ref, o_ref,
                           m_sc, l_sc, acc_sc):
    ki = pl.program_id(2)

    @pl.when(ki == 0)
    def _():
        m_sc[...] = jnp.full_like(m_sc, -jnp.inf)
        l_sc[...] = jnp.zeros_like(l_sc)
        acc_sc[...] = jnp.zeros_like(acc_sc)

    m, l, acc = _attn_step(q_ref[0], kT_ref[0], v_ref[0],
                           m_sc[...], l_sc[...], acc_sc[...])
    m_sc[...] = m
    l_sc[...] = l
    acc_sc[...] = acc

    @pl.when(ki == pl.num_programs(2) - 1)
    def _():
        out = acc_sc[...] * pl.reciprocal(l_sc[...], approx=True)
        proj = jnp.dot(out.astype(jnp.bfloat16), wo_ref[...],
                       preferred_element_type=jnp.float32) + bo_ref[...]
        o_ref[0] = x_ref[0] + proj


# ---------------------------------------------------------------------------
# Wrapper
# ---------------------------------------------------------------------------
def spatial_self_attention(x_nchw, params, *, force_streaming=False, max_tile=None):
    """x_nchw: [B, C, H, W] float32. Returns [B, C, H, W]."""
    B, C, H, W = x_nchw.shape
    N = H * W
    G = NUM_GROUPS
    assert C % G == 0, "in_channels must be divisible by 32 (GroupNorm)"
    Cg = C // G
    scale = float(int(C) ** (-0.5))
    if max_tile is None:
        max_tile = 1024 if _VMEM_CAP >= 96 * _MB else 512

    # TODO(synk): NCHW<->NHWC relayout is a plain XLA transpose; it disappears if the
    # producer emits NHWC.  No channel padding / padded copy of x is materialized.
    x = jnp.transpose(x_nchw, (0, 2, 3, 1)).reshape(B, N, C).astype(jnp.float32)

    gamma = params["gamma"].astype(jnp.float32).reshape(1, C)
    beta = params["beta"].astype(jnp.float32).reshape(1, C)

    def w_in_out(w):  # 1x1-conv weight [Cout, Cin] -> matmul layout [Cin, Cout]
        return w.astype(jnp.float32).T

    # Fold 1/sqrt(C) into q weights/bias in f32 BEFORE the bf16 cast.
    wqkv = jnp.stack([w_in_out(params["wq"]) * scale,
                      w_in_out(params["wk"]),
                      w_in_out(params["wv"])]).astype(jnp.bfloat16)          # [3, C, C]
    bqkv = jnp.stack([params["bq"] * scale, params["bk"], params["bv"]]
                     ).astype(jnp.float32).reshape(3, 1, C)                  # [3, 1, C]
    wo = w_in_out(params["wo"]).astype(jnp.bfloat16)                         # [C, C]
    bo = params["bo"].astype(jnp.float32).reshape(1, C)

    TS = _pick_tile(N, max_tile)
    TQ = _pick_tile(N, max_tile)
    TK = _pick_tile(N, max_tile)

    def cparams(sem):
        return pltpu.CompilerParams(dimension_semantics=sem,
                                    vmem_limit_bytes=VMEM_LIMIT)

    qkv_out_shapes = (jax.ShapeDtypeStruct((B, N, C), jnp.bfloat16),   # q (scale folded)
                      jax.ShapeDtypeStruct((B, C, N), jnp.bfloat16),   # K^T
                      jax.ShapeDtypeStruct((B, N, C), jnp.bfloat16))   # v

    # ---------------- GroupNorm + QKV projection ----------------------------
    gn_fused_bytes = (2 * N * C * _F32              # double-buffered x slab
                      + 2 * 3 * N * C * _BF16       # double-buffered q / K^T / v outputs
                      + 2 * 3 * C * C * _BF16       # stacked qkv weights
                      + 8 * TS * C * _F32)          # per-tile temporaries (coarse)
    use_fused_gn = (not force_streaming) and gn_fused_bytes <= FUSE_BUDGET

    if use_fused_gn:
        ch = jnp.arange(C)
        gmaskT = ((ch[None, :] // Cg) == jnp.arange(G)[:, None]).astype(jnp.float32)  # [G, C]
        q_p, kT_p, v_p = pl.pallas_call(
            functools.partial(_gn_qkv_fused_kernel, ts=TS, cg=Cg, eps=EPS),
            out_shape=qkv_out_shapes,
            grid_spec=pltpu.PrefetchScalarGridSpec(
                num_scalar_prefetch=0,
                grid=(B,),
                in_specs=[
                    pl.BlockSpec((1, N, C), lambda b: (b, 0, 0)),      # x (resident slab)
                    pl.BlockSpec((G, C), lambda b: (0, 0)),            # group one-hot
                    pl.BlockSpec((1, C), lambda b: (0, 0)),            # gamma
                    pl.BlockSpec((1, C), lambda b: (0, 0)),            # beta
                    pl.BlockSpec((3, C, C), lambda b: (0, 0, 0)),      # wq|wk|wv (bf16)
                    pl.BlockSpec((3, 1, C), lambda b: (0, 0, 0)),      # bq|bk|bv (f32)
                ],
                out_specs=[
                    pl.BlockSpec((1, N, C), lambda b: (b, 0, 0)),
                    pl.BlockSpec((1, C, N), lambda b: (b, 0, 0)),
                    pl.BlockSpec((1, N, C), lambda b: (b, 0, 0)),
                ],
            ),
            compiler_params=cparams(("parallel",)),
        )(x, gmaskT, gamma, beta, wqkv, bqkv)
    else:
        # Streaming fallback: token-tiled stats pass, tiny XLA group-reduce glue,
        # then token-tiled GN-apply + QKV pass.
        sum_c, sq_c = pl.pallas_call(
            _gn_stats_kernel,
            out_shape=(jax.ShapeDtypeStruct((B, 1, C), jnp.float32),
                       jax.ShapeDtypeStruct((B, 1, C), jnp.float32)),
            grid_spec=pltpu.PrefetchScalarGridSpec(
                num_scalar_prefetch=0,
                grid=(B, N // TS),
                in_specs=[pl.BlockSpec((1, TS, C), lambda b, t: (b, t, 0))],
                out_specs=[pl.BlockSpec((1, 1, C), lambda b, t: (b, 0, 0)),
                           pl.BlockSpec((1, 1, C), lambda b, t: (b, 0, 0))],
            ),
            compiler_params=cparams(("parallel", "arbitrary")),
        )(x)
        cnt = float(N * Cg)
        sum_g = sum_c.reshape(B, G, Cg).sum(axis=-1)                 # [B, G]
        sq_g = sq_c.reshape(B, G, Cg).sum(axis=-1)
        mean_g = sum_g / cnt
        var_g = sq_g / cnt - mean_g * mean_g
        inv_g = lax.rsqrt(var_g + EPS)
        mean_c = jnp.repeat(mean_g, Cg, axis=-1).reshape(B, 1, C)
        inv_c = jnp.repeat(inv_g, Cg, axis=-1).reshape(B, 1, C)

        q_p, kT_p, v_p = pl.pallas_call(
            _gn_qkv_kernel,
            out_shape=qkv_out_shapes,
            grid_spec=pltpu.PrefetchScalarGridSpec(
                num_scalar_prefetch=0,
                grid=(B, N // TS),
                in_specs=[
                    pl.BlockSpec((1, TS, C), lambda b, t: (b, t, 0)),   # x
                    pl.BlockSpec((1, 1, C), lambda b, t: (b, 0, 0)),    # mean
                    pl.BlockSpec((1, 1, C), lambda b, t: (b, 0, 0)),    # rsqrt(var+eps)
                    pl.BlockSpec((1, C), lambda b, t: (0, 0)),          # gamma
                    pl.BlockSpec((1, C), lambda b, t: (0, 0)),          # beta
                    pl.BlockSpec((3, C, C), lambda b, t: (0, 0, 0)),    # wq|wk|wv
                    pl.BlockSpec((3, 1, C), lambda b, t: (0, 0, 0)),    # bq|bk|bv
                ],
                out_specs=[
                    pl.BlockSpec((1, TS, C), lambda b, t: (b, t, 0)),
                    pl.BlockSpec((1, C, TS), lambda b, t: (b, 0, t)),
                    pl.BlockSpec((1, TS, C), lambda b, t: (b, t, 0)),
                ],
            ),
            compiler_params=cparams(("parallel", "parallel")),
        )(x, mean_c, inv_c, gamma, beta, wqkv, bqkv)

    # ---------------- attention + output projection + residual ---------------
    kv_resident_bytes = (2 * 2 * N * C * _BF16                 # double-buffered K^T + V slabs
                         + 2 * TQ * C * (_BF16 + 2 * _F32)     # q / x / out blocks
                         + 2 * C * C * _BF16                   # wo
                         + 2 * TQ * TK * _F32                  # score / prob temporaries
                         + TQ * C * _F32)                      # accumulator
    kv_resident = (not force_streaming) and kv_resident_bytes <= FUSE_BUDGET

    if kv_resident:
        out = pl.pallas_call(
            functools.partial(_attn_resident_kernel, tk=TK),
            out_shape=jax.ShapeDtypeStruct((B, N, C), jnp.float32),
            grid_spec=pltpu.PrefetchScalarGridSpec(
                num_scalar_prefetch=0,
                grid=(B, N // TQ),
                in_specs=[
                    pl.BlockSpec((1, TQ, C), lambda b, qi: (b, qi, 0)),   # x (residual)
                    pl.BlockSpec((1, TQ, C), lambda b, qi: (b, qi, 0)),   # q
                    pl.BlockSpec((1, C, N), lambda b, qi: (b, 0, 0)),     # K^T (VMEM-resident)
                    pl.BlockSpec((1, N, C), lambda b, qi: (b, 0, 0)),     # V   (VMEM-resident)
                    pl.BlockSpec((C, C), lambda b, qi: (0, 0)),           # wo
                    pl.BlockSpec((1, C), lambda b, qi: (0, 0)),           # bo
                ],
                out_specs=pl.BlockSpec((1, TQ, C), lambda b, qi: (b, qi, 0)),
            ),
            compiler_params=cparams(("parallel", "parallel")),
        )(x, q_p, kT_p, v_p, wo, bo)
    else:
        out = pl.pallas_call(
            _attn_streaming_kernel,
            out_shape=jax.ShapeDtypeStruct((B, N, C), jnp.float32),
            grid_spec=pltpu.PrefetchScalarGridSpec(
                num_scalar_prefetch=0,
                grid=(B, N // TQ, N // TK),
                in_specs=[
                    pl.BlockSpec((1, TQ, C), lambda b, qi, ki: (b, qi, 0)),
                    pl.BlockSpec((1, TQ, C), lambda b, qi, ki: (b, qi, 0)),
                    pl.BlockSpec((1, C, TK), lambda b, qi, ki: (b, 0, ki)),
                    pl.BlockSpec((1, TK, C), lambda b, qi, ki: (b, ki, 0)),
                    pl.BlockSpec((C, C), lambda b, qi, ki: (0, 0)),
                    pl.BlockSpec((1, C), lambda b, qi, ki: (0, 0)),
                ],
                out_specs=pl.BlockSpec((1, TQ, C), lambda b, qi, ki: (b, qi, 0)),
                scratch_shapes=[pltpu.VMEM((TQ, 1), jnp.float32),     # running max
                                pltpu.VMEM((TQ, 1), jnp.float32),     # running denom
                                pltpu.VMEM((TQ, C), jnp.float32)],    # output accumulator
            ),
            compiler_params=cparams(("parallel", "parallel", "arbitrary")),
        )(x, q_p, kT_p, v_p, wo, bo)

    return jnp.transpose(out.reshape(B, H, W, C), (0, 3, 1, 2))


# ---------------------------------------------------------------------------
# Pure-JAX reference mirroring the PyTorch forward.
# ---------------------------------------------------------------------------
def reference(x_nchw, params):
    B, C, H, W = x_nchw.shape
    G = NUM_GROUPS
    xr = x_nchw.reshape(B, G, C // G, H, W)
    mean = xr.mean(axis=(2, 3, 4), keepdims=True)
    var = xr.var(axis=(2, 3, 4), keepdims=True)
    hn = ((xr - mean) / jnp.sqrt(var + EPS)).reshape(B, C, H, W)
    hn = hn * params["gamma"][None, :, None, None] + params["beta"][None, :, None, None]

    def conv1x1(t, w, b):
        return jnp.einsum('bchw,oc->bohw', t, w) + b[None, :, None, None]

    q = conv1x1(hn, params["wq"], params["bq"])
    k = conv1x1(hn, params["wk"], params["bk"])
    v = conv1x1(hn, params["wv"], params["bv"])
    qf = q.reshape(B, C, H * W).transpose(0, 2, 1)
    kf = k.reshape(B, C, H * W)
    w_ = jnp.einsum('bij,bjk->bik', qf, kf) * (int(C) ** (-0.5))
    w_ = jax.nn.softmax(w_, axis=2)
    vf = v.reshape(B, C, H * W)
    h_ = jnp.einsum('bcj,bij->bci', vf, w_)
    h_ = h_.reshape(B, C, H, W)
    h_ = conv1x1(h_, params["wo"], params["bo"])
    return x_nchw + h_


if __name__ == "__main__":
    B, C, H, W = 2, 64, 16, 16   # C must be a multiple of 32 for GroupNorm(32, C)
    key = jax.random.PRNGKey(0)
    keys = jax.random.split(key, 11)

    x = jax.random.normal(keys[0], (B, C, H, W), dtype=jnp.float32)

    params = {
        "gamma": 1.0 + 0.1 * jax.random.normal(keys[1], (C,), dtype=jnp.float32),
        "beta": 0.1 * jax.random.normal(keys[2], (C,), dtype=jnp.float32),
        "wq": 0.05 * jax.random.normal(keys[3], (C, C), dtype=jnp.float32),
        "bq": 0.01 * jax.random.normal(keys[4], (C,), dtype=jnp.float32),
        "wk": 0.05 * jax.random.normal(keys[5], (C, C), dtype=jnp.float32),
        "bk": 0.01 * jax.random.normal(keys[6], (C,), dtype=jnp.float32),
        "wv": 0.05 * jax.random.normal(keys[7], (C, C), dtype=jnp.float32),
        "bv": 0.01 * jax.random.normal(keys[8], (C,), dtype=jnp.float32),
        "wo": 0.05 * jax.random.normal(keys[9], (C, C), dtype=jnp.float32),
        "bo": 0.01 * jax.random.normal(keys[10], (C,), dtype=jnp.float32),
    }

    y_ref = jax.block_until_ready(reference(x, params))

    # Primary path: fused GN+QKV (x resident per batch) + K/V-resident attention.
    # max_tile=128 forces multiple token tiles so the in-kernel tile loops are exercised.
    y_fused = jax.block_until_ready(
        spatial_self_attention(x, params, max_tile=128))
    np.testing.assert_allclose(np.asarray(y_fused), np.asarray(y_ref),
                               rtol=2e-2, atol=2e-2)

    # Streaming fallback path (stats kernel + apply kernel + flash-attention kernel).
    y_stream = jax.block_until_ready(
        spatial_self_attention(x, params, force_streaming=True, max_tile=128))
    np.testing.assert_allclose(np.asarray(y_stream), np.asarray(y_ref),
                               rtol=2e-2, atol=2e-2)

    print("KERNEL_OK")
</pallas_src>

<mosaic_0001>
module attributes {stable_mosaic.version = 11 : i64} {
  func.func @_gn_qkv_fused_kernel(%arg0: i32, %arg1: memref<1x256x64xf32, #tpu.memory_space<vmem>>, %arg2: memref<32x64xf32, #tpu.memory_space<vmem>>, %arg3: memref<1x64xf32, #tpu.memory_space<vmem>>, %arg4: memref<1x64xf32, #tpu.memory_space<vmem>>, %arg5: memref<3x64x64xbf16, #tpu.memory_space<vmem>>, %arg6: memref<3x1x64xf32, #tpu.memory_space<vmem>>, %arg7: memref<1x256x64xbf16, #tpu.memory_space<vmem>>, %arg8: memref<1x64x256xbf16, #tpu.memory_space<vmem>>, %arg9: memref<1x256x64xbf16, #tpu.memory_space<vmem>>) attributes {dimension_semantics = [#tpu.dimension_semantics<parallel>], iteration_bounds = array<i64: 2>, scalar_prefetch = 0 : i64, scratch_operands = 0 : i64, tpu.core_type = #tpu.core_type<tc>, window_params = [{transform_indices = @transform_0, window_bounds = array<i64: 1, 256, 64>}, {pipeline_mode = #tpu.pipeline_mode<synchronous>, transform_indices = @transform_1, window_bounds = array<i64: 32, 64>}, {pipeline_mode = #tpu.pipeline_mode<synchronous>, transform_indices = @transform_2, window_bounds = array<i64: 1, 64>}, {pipeline_mode = #tpu.pipeline_mode<synchronous>, transform_indices = @transform_3, window_bounds = array<i64: 1, 64>}, {pipeline_mode = #tpu.pipeline_mode<synchronous>, transform_indices = @transform_4, window_bounds = array<i64: 3, 64, 64>}, {pipeline_mode = #tpu.pipeline_mode<synchronous>, transform_indices = @transform_5, window_bounds = array<i64: 3, 1, 64>}, {transform_indices = @transform_6, window_bounds = array<i64: 1, 256, 64>}, {transform_indices = @transform_7, window_bounds = array<i64: 1, 64, 256>}, {transform_indices = @transform_8, window_bounds = array<i64: 1, 256, 64>}]} {
    %cst = arith.constant 0.000000e+00 : f32
    %0 = vector.broadcast %cst : f32 to vector<1x64xf32>
    %cst_0 = arith.constant 0.000000e+00 : f32
    %1 = vector.broadcast %cst_0 : f32 to vector<1x64xf32>
    %c0 = arith.constant 0 : index
    %c0_1 = arith.constant 0 : index
    %c0_2 = arith.constant 0 : index
    %2 = vector.load %arg1[%c0, %c0_1, %c0_2] : memref<1x256x64xf32, #tpu.memory_space<vmem>>, vector<1x128x64xf32>
    %3 = vector.shape_cast %2 : vector<1x128x64xf32> to vector<128x64xf32>
    %cst_3 = arith.constant dense<0.000000e+00> : vector<64xf32>
    %4 = vector.multi_reduction <add>, %3, %cst_3 [0] : vector<128x64xf32> to vector<64xf32>
    %5 = vector.shape_cast %4 : vector<64xf32> to vector<1x64xf32>
    %6 = arith.addf %0, %5 : vector<1x64xf32>
    %7 = arith.mulf %3, %3 : vector<128x64xf32>
    %cst_4 = arith.constant dense<0.000000e+00> : vector<64xf32>
    %8 = vector.multi_reduction <add>, %7, %cst_4 [0] : vector<128x64xf32> to vector<64xf32>
    %9 = vector.shape_cast %8 : vector<64xf32> to vector<1x64xf32>
    %10 = arith.addf %1, %9 : vector<1x64xf32>
    %c0_5 = arith.constant 0 : index
    %c128 = arith.constant 128 : index
    %c0_6 = arith.constant 0 : index
    %11 = vector.load %arg1[%c0_5, %c128, %c0_6] : memref<1x256x64xf32, #tpu.memory_space<vmem>>, vector<1x128x64xf32>
    %12 = vector.shape_cast %11 : vector<1x128x64xf32> to vector<128x64xf32>
    %cst_7 = arith.constant dense<0.000000e+00> : vector<64xf32>
    %13 = vector.multi_reduction <add>, %12, %cst_7 [0] : vector<128x64xf32> to vector<64xf32>
    %14 = vector.shape_cast %13 : vector<64xf32> to vector<1x64xf32>
    %15 = arith.addf %6, %14 : vector<1x64xf32>
    %16 = arith.mulf %12, %12 : vector<128x64xf32>
    %cst_8 = arith.constant dense<0.000000e+00> : vector<64xf32>
    %17 = vector.multi_reduction <add>, %16, %cst_8 [0] : vector<128x64xf32> to vector<64xf32>
    %18 = vector.shape_cast %17 : vector<64xf32> to vector<1x64xf32>
    %19 = arith.addf %10, %18 : vector<1x64xf32>
    %c0_9 = arith.constant 0 : index
    %c0_10 = arith.constant 0 : index
    %20 = vector.load %arg2[%c0_9, %c0_10] : memref<32x64xf32, #tpu.memory_space<vmem>>, vector<32x64xf32>
    %21 = vector.broadcast %15 : vector<1x64xf32> to vector<32x64xf32>
    %22 = arith.mulf %20, %21 : vector<32x64xf32>
    %cst_11 = arith.constant dense<0.000000e+00> : vector<32xf32>
    %23 = vector.multi_reduction <add>, %22, %cst_11 [1] : vector<32x64xf32> to vector<32xf32>
    %24 = vector.shape_cast %23 : vector<32xf32> to vector<32x1xf32>
    %25 = vector.broadcast %19 : vector<1x64xf32> to vector<32x64xf32>
    %26 = arith.mulf %20, %25 : vector<32x64xf32>
    %cst_12 = arith.constant dense<0.000000e+00> : vector<32xf32>
    %27 = vector.multi_reduction <add>, %26, %cst_12 [1] : vector<32x64xf32> to vector<32xf32>
    %28 = vector.shape_cast %27 : vector<32xf32> to vector<32x1xf32>
    %cst_13 = arith.constant 0.001953125 : f32
    %29 = vector.broadcast %cst_13 : f32 to vector<32x1xf32>
    %30 = arith.mulf %24, %29 : vector<32x1xf32>
    %cst_14 = arith.constant 0.001953125 : f32
    %31 = vector.broadcast %cst_14 : f32 to vector<32x1xf32>
    %32 = arith.mulf %28, %31 : vector<32x1xf32>
    %33 = arith.mulf %30, %30 : vector<32x1xf32>
    %34 = arith.subf %32, %33 : vector<32x1xf32>
    %cst_15 = arith.constant 9.99999997E-7 : f32
    %35 = vector.broadcast %cst_15 : f32 to vector<32x1xf32>
    %36 = arith.addf %34, %35 : vector<32x1xf32>
    %37 = math.rsqrt %36 : vector<32x1xf32>
    %38 = vector.broadcast %30 : vector<32x1xf32> to vector<32x64xf32>
    %39 = arith.mulf %20, %38 : vector<32x64xf32>
    %cst_16 = arith.constant dense<0.000000e+00> : vector<64xf32>
    %40 = vector.multi_reduction <add>, %39, %cst_16 [0] : vector<32x64xf32> to vector<64xf32>
    %41 = vector.shape_cast %40 : vector<64xf32> to vector<1x64xf32>
    %42 = vector.broadcast %37 : vector<32x1xf32> to vector<32x64xf32>
    %43 = arith.mulf %20, %42 : vector<32x64xf32>
    %cst_17 = arith.constant dense<0.000000e+00> : vector<64xf32>
    %44 = vector.multi_reduction <add>, %43, %cst_17 [0] : vector<32x64xf32> to vector<64xf32>
    %45 = vector.shape_cast %44 : vector<64xf32> to vector<1x64xf32>
    %c0_18 = arith.constant 0 : index
    %c0_19 = arith.constant 0 : index
    %46 = vector.load %arg3[%c0_18, %c0_19] : memref<1x64xf32, #tpu.memory_space<vmem>>, vector<1x64xf32>
    %47 = arith.mulf %45, %46 : vector<1x64xf32>
    %c0_20 = arith.constant 0 : index
    %c0_21 = arith.constant 0 : index
    %48 = vector.load %arg4[%c0_20, %c0_21] : memref<1x64xf32, #tpu.memory_space<vmem>>, vector<1x64xf32>
    %49 = arith.mulf %41, %47 : vector<1x64xf32>
    %50 = arith.subf %48, %49 : vector<1x64xf32>
    %c0_22 = arith.constant 0 : index
    %c0_23 = arith.constant 0 : index
    %c0_24 = arith.constant 0 : index
    %51 = vector.load %arg1[%c0_22, %c0_23, %c0_24] : memref<1x256x64xf32, #tpu.memory_space<vmem>>, vector<1x128x64xf32>
    %52 = vector.shape_cast %51 : vector<1x128x64xf32> to vector<128x64xf32>
    %53 = vector.broadcast %47 : vector<1x64xf32> to vector<128x64xf32>
    %54 = arith.mulf %52, %53 : vector<128x64xf32>
    %55 = vector.broadcast %50 : vector<1x64xf32> to vector<128x64xf32>
    %56 = arith.addf %54, %55 : vector<128x64xf32>
    %57 = arith.truncf %56 : vector<128x64xf32> to vector<128x64xbf16>
    %c0_25 = arith.constant 0 : index
    %c0_26 = arith.constant 0 : index
    %c0_27 = arith.constant 0 : index
    %58 = vector.load %arg5[%c0_25, %c0_26, %c0_27] : memref<3x64x64xbf16, #tpu.memory_space<vmem>>, vector<1x64x64xbf16>
    %59 = vector.shape_cast %58 : vector<1x64x64xbf16> to vector<64x64xbf16>
    %cst_28 = arith.constant dense<0.000000e+00> : vector<128x64xf32>
    %60 = tpu.matmul %57, %59, %cst_28 {dimension_numbers = #tpu.dot_dimension_numbers<[1], [0], [0], [1], [0, 0, 1, 1], [], []>} : vector<128x64xbf16>, vector<64x64xbf16>, vector<128x64xf32> -> vector<128x64xf32>
    %c0_29 = arith.constant 0 : index
    %c0_30 = arith.constant 0 : index
    %c0_31 = arith.constant 0 : index
    %61 = vector.load %arg6[%c0_29, %c0_30, %c0_31] : memref<3x1x64xf32, #tpu.memory_space<vmem>>, vector<1x1x64xf32>
    %62 = vector.shape_cast %61 : vector<1x1x64xf32> to vector<1x64xf32>
    %63 = vector.broadcast %62 : vector<1x64xf32> to vector<128x64xf32>
    %64 = arith.addf %60, %63 : vector<128x64xf32>
    %c1 = arith.constant 1 : index
    %c0_32 = arith.constant 0 : index
    %c0_33 = arith.constant 0 : index
    %65 = vector.load %arg5[%c1, %c0_32, %c0_33] : memref<3x64x64xbf16, #tpu.memory_space<vmem>>, vector<1x64x64xbf16>
    %66 = vector.shape_cast %65 : vector<1x64x64xbf16> to vector<64x64xbf16>
    %cst_34 = arith.constant dense<0.000000e+00> : vector<128x64xf32>
    %67 = tpu.matmul %57, %66, %cst_34 {dimension_numbers = #tpu.dot_dimension_numbers<[1], [0], [0], [1], [0, 0, 1, 1], [], []>} : vector<128x64xbf16>, vector<64x64xbf16>, vector<128x64xf32> -> vector<128x64xf32>
    %c1_35 = arith.constant 1 : index
    %c0_36 = arith.constant 0 : index
    %c0_37 = arith.constant 0 : index
    %68 = vector.load %arg6[%c1_35, %c0_36, %c0_37] : memref<3x1x64xf32, #tpu.memory_space<vmem>>, vector<1x1x64xf32>
    %69 = vector.shape_cast %68 : vector<1x1x64xf32> to vector<1x64xf32>
    %70 = vector.broadcast %69 : vector<1x64xf32> to vector<128x64xf32>
    %71 = arith.addf %67, %70 : vector<128x64xf32>
    %c2 = arith.constant 2 : index
    %c0_38 = arith.constant 0 : index
    %c0_39 = arith.constant 0 : index
    %72 = vector.load %arg5[%c2, %c0_38, %c0_39] : memref<3x64x64xbf16, #tpu.memory_space<vmem>>, vector<1x64x64xbf16>
    %73 = vector.shape_cast %72 : vector<1x64x64xbf16> to vector<64x64xbf16>
    %cst_40 = arith.constant dense<0.000000e+00> : vector<128x64xf32>
    %74 = tpu.matmul %57, %73, %cst_40 {dimension_numbers = #tpu.dot_dimension_numbers<[1], [0], [0], [1], [0, 0, 1, 1], [], []>} : vector<128x64xbf16>, vector<64x64xbf16>, vector<128x64xf32> -> vector<128x64xf32>
    %c2_41 = arith.constant 2 : index
    %c0_42 = arith.constant 0 : index
    %c0_43 = arith.constant 0 : index
    %75 = vector.load %arg6[%c2_41, %c0_42, %c0_43] : memref<3x1x64xf32, #tpu.memory_space<vmem>>, vector<1x1x64xf32>
    %76 = vector.shape_cast %75 : vector<1x1x64xf32> to vector<1x64xf32>
    %77 = vector.broadcast %76 : vector<1x64xf32> to vector<128x64xf32>
    %78 = arith.addf %74, %77 : vector<128x64xf32>
    %79 = arith.truncf %64 : vector<128x64xf32> to vector<128x64xbf16>
    %c0_44 = arith.constant 0 : index
    %c0_45 = arith.constant 0 : index
    %c0_46 = arith.constant 0 : index
    %80 = vector.load %arg7[%c0_44, %c0_45, %c0_46] : memref<1x256x64xbf16, #tpu.memory_space<vmem>>, vector<1x128x64xbf16>
    %81 = vector.shape_cast %80 : vector<1x128x64xbf16> to vector<128x64xbf16>
    %82 = vector.shape_cast %79 : vector<128x64xbf16> to vector<1x128x64xbf16>
    tpu.vector_store %arg7[%c0_44, %c0_45, %c0_46], %82 {strides = array<i32>} : memref<1x256x64xbf16, #tpu.memory_space<vmem>>, vector<1x128x64xbf16>,
    %83 = tpu.transpose %71, [1, 0] : vector<128x64xf32> -> vector<64x128xf32>
    %84 = arith.truncf %83 : vector<64x128xf32> to vector<64x128xbf16>
    %c0_47 = arith.constant 0 : index
    %c0_48 = arith.constant 0 : index
    %c0_49 = arith.constant 0 : index
    %85 = vector.load %arg8[%c0_47, %c0_48, %c0_49] : memref<1x64x256xbf16, #tpu.memory_space<vmem>>, vector<1x64x128xbf16>
    %86 = vector.shape_cast %85 : vector<1x64x128xbf16> to vector<64x128xbf16>
    %87 = vector.shape_cast %84 : vector<64x128xbf16> to vector<1x64x128xbf16>
    tpu.vector_store %arg8[%c0_47, %c0_48, %c0_49], %87 {strides = array<i32>} : memref<1x64x256xbf16, #tpu.memory_space<vmem>>, vector<1x64x128xbf16>,
    %88 = arith.truncf %78 : vector<128x64xf32> to vector<128x64xbf16>
    %c0_50 = arith.constant 0 : index
    %c0_51 = arith.constant 0 : index
    %c0_52 = arith.constant 0 : index
    %89 = vector.load %arg9[%c0_50, %c0_51, %c0_52] : memref<1x256x64xbf16, #tpu.memory_space<vmem>>, vector<1x128x64xbf16>
    %90 = vector.shape_cast %89 : vector<1x128x64xbf16> to vector<128x64xbf16>
    %91 = vector.shape_cast %88 : vector<128x64xbf16> to vector<1x128x64xbf16>
    tpu.vector_store %arg9[%c0_50, %c0_51, %c0_52], %91 {strides = array<i32>} : memref<1x256x64xbf16, #tpu.memory_space<vmem>>, vector<1x128x64xbf16>,
    %c0_53 = arith.constant 0 : index
    %c128_54 = arith.constant 128 : index
    %c0_55 = arith.constant 0 : index
    %92 = vector.load %arg1[%c0_53, %c128_54, %c0_55] : memref<1x256x64xf32, #tpu.memory_space<vmem>>, vector<1x128x64xf32>
    %93 = vector.shape_cast %92 : vector<1x128x64xf32> to vector<128x64xf32>
    %94 = vector.broadcast %47 : vector<1x64xf32> to vector<128x64xf32>
    %95 = arith.mulf %93, %94 : vector<128x64xf32>
    %96 = vector.broadcast %50 : vector<1x64xf32> to vector<128x64xf32>
    %97 = arith.addf %95, %96 : vector<128x64xf32>
    %98 = arith.truncf %97 : vector<128x64xf32> to vector<128x64xbf16>
    %c0_56 = arith.constant 0 : index
    %c0_57 = arith.constant 0 : index
    %c0_58 = arith.constant 0 : index
    %99 = vector.load %arg5[%c0_56, %c0_57, %c0_58] : memref<3x64x64xbf16, #tpu.memory_space<vmem>>, vector<1x64x64xbf16>
    %100 = vector.shape_cast %99 : vector<1x64x64xbf16> to vector<64x64xbf16>
    %cst_59 = arith.constant dense<0.000000e+00> : vector<128x64xf32>
    %101 = tpu.matmul %98, %100, %cst_59 {dimension_numbers = #tpu.dot_dimension_numbers<[1], [0], [0], [1], [0, 0, 1, 1], [], []>} : vector<128x64xbf16>, vector<64x64xbf16>, vector<128x64xf32> -> vector<128x64xf32>
    %c0_60 = arith.constant 0 : index
    %c0_61 = arith.constant 0 : index
    %c0_62 = arith.constant 0 : index
    %102 = vector.load %arg6[%c0_60, %c0_61, %c0_62] : memref<3x1x64xf32, #tpu.memory_space<vmem>>, vector<1x1x64xf32>
    %103 = vector.shape_cast %102 : vector<1x1x64xf32> to vector<1x64xf32>
    %104 = vector.broadcast %103 : vector<1x64xf32> to vector<128x64xf32>
    %105 = arith.addf %101, %104 : vector<128x64xf32>
    %c1_63 = arith.constant 1 : index
    %c0_64 = arith.constant 0 : index
    %c0_65 = arith.constant 0 : index
    %106 = vector.load %arg5[%c1_63, %c0_64, %c0_65] : memref<3x64x64xbf16, #tpu.memory_space<vmem>>, vector<1x64x64xbf16>
    %107 = vector.shape_cast %106 : vector<1x64x64xbf16> to vector<64x64xbf16>
    %cst_66 = arith.constant dense<0.000000e+00> : vector<128x64xf32>
    %108 = tpu.matmul %98, %107, %cst_66 {dimension_numbers = #tpu.dot_dimension_numbers<[1], [0], [0], [1], [0, 0, 1, 1], [], []>} : vector<128x64xbf16>, vector<64x64xbf16>, vector<128x64xf32> -> vector<128x64xf32>
    %c1_67 = arith.constant 1 : index
    %c0_68 = arith.constant 0 : index
    %c0_69 = arith.constant 0 : index
    %109 = vector.load %arg6[%c1_67, %c0_68, %c0_69] : memref<3x1x64xf32, #tpu.memory_space<vmem>>, vector<1x1x64xf32>
    %110 = vector.shape_cast %109 : vector<1x1x64xf32> to vector<1x64xf32>
    %111 = vector.broadcast %110 : vector<1x64xf32> to vector<128x64xf32>
    %112 = arith.addf %108, %111 : vector<128x64xf32>
    %c2_70 = arith.constant 2 : index
    %c0_71 = arith.constant 0 : index
    %c0_72 = arith.constant 0 : index
    %113 = vector.load %arg5[%c2_70, %c0_71, %c0_72] : memref<3x64x64xbf16, #tpu.memory_space<vmem>>, vector<1x64x64xbf16>
    %114 = vector.shape_cast %113 : vector<1x64x64xbf16> to vector<64x64xbf16>
    %cst_73 = arith.constant dense<0.000000e+00> : vector<128x64xf32>
    %115 = tpu.matmul %98, %114, %cst_73 {dimension_numbers = #tpu.dot_dimension_numbers<[1], [0], [0], [1], [0, 0, 1, 1], [], []>} : vector<128x64xbf16>, vector<64x64xbf16>, vector<128x64xf32> -> vector<128x64xf32>
    %c2_74 = arith.constant 2 : index
    %c0_75 = arith.constant 0 : index
    %c0_76 = arith.constant 0 : index
    %116 = vector.load %arg6[%c2_74, %c0_75, %c0_76] : memref<3x1x64xf32, #tpu.memory_space<vmem>>, vector<1x1x64xf32>
    %117 = vector.shape_cast %116 : vector<1x1x64xf32> to vector<1x64xf32>
    %118 = vector.broadcast %117 : vector<1x64xf32> to vector<128x64xf32>
    %119 = arith.addf %115, %118 : vector<128x64xf32>
    %120 = arith.truncf %105 : vector<128x64xf32> to vector<128x64xbf16>
    %c0_77 = arith.constant 0 : index
    %c128_78 = arith.constant 128 : index
    %c0_79 = arith.constant 0 : index
    %121 = vector.load %arg7[%c0_77, %c128_78, %c0_79] : memref<1x256x64xbf16, #tpu.memory_space<vmem>>, vector<1x128x64xbf16>
    %122 = vector.shape_cast %121 : vector<1x128x64xbf16> to vector<128x64xbf16>
    %123 = vector.shape_cast %120 : vector<128x64xbf16> to vector<1x128x64xbf16>
    tpu.vector_store %arg7[%c0_77, %c128_78, %c0_79], %123 {strides = array<i32>} : memref<1x256x64xbf16, #tpu.memory_space<vmem>>, vector<1x128x64xbf16>,
    %124 = tpu.transpose %112, [1, 0] : vector<128x64xf32> -> vector<64x128xf32>
    %125 = arith.truncf %124 : vector<64x128xf32> to vector<64x128xbf16>
    %c0_80 = arith.constant 0 : index
    %c0_81 = arith.constant 0 : index
    %c128_82 = arith.constant 128 : index
    %126 = vector.load %arg8[%c0_80, %c0_81, %c128_82] : memref<1x64x256xbf16, #tpu.memory_space<vmem>>, vector<1x64x128xbf16>
    %127 = vector.shape_cast %126 : vector<1x64x128xbf16> to vector<64x128xbf16>
    %128 = vector.shape_cast %125 : vector<64x128xbf16> to vector<1x64x128xbf16>
    tpu.vector_store %arg8[%c0_80, %c0_81, %c128_82], %128 {strides = array<i32>} : memref<1x64x256xbf16, #tpu.memory_space<vmem>>, vector<1x64x128xbf16>,
    %129 = arith.truncf %119 : vector<128x64xf32> to vector<128x64xbf16>
    %c0_83 = arith.constant 0 : index
    %c128_84 = arith.constant 128 : index
    %c0_85 = arith.constant 0 : index
    %130 = vector.load %arg9[%c0_83, %c128_84, %c0_85] : memref<1x256x64xbf16, #tpu.memory_space<vmem>>, vector<1x128x64xbf16>
    %131 = vector.shape_cast %130 : vector<1x128x64xbf16> to vector<128x64xbf16>
    %132 = vector.shape_cast %129 : vector<128x64xbf16> to vector<1x128x64xbf16>
    tpu.vector_store %arg9[%c0_83, %c128_84, %c0_85], %132 {strides = array<i32>} : memref<1x256x64xbf16, #tpu.memory_space<vmem>>, vector<1x128x64xbf16>,
    return
  }
  func.func @transform_0(%arg0: i32) -> (i32, i32, i32) {
    %c0_i32 = arith.constant 0 : i32
    %c0_i32_0 = arith.constant 0 : i32
    %c0_i32_1 = arith.constant 0 : i32
    return %arg0, %c0_i32, %c0_i32_0 : i32, i32, i32
  }
  func.func @transform_1(%arg0: i32) -> (i32, i32) {
    %c0_i32 = arith.constant 0 : i32
    %c0_i32_0 = arith.constant 0 : i32
    %c0_i32_1 = arith.constant 0 : i32
    return %c0_i32, %c0_i32_0 : i32, i32
  }
  func.func @transform_2(%arg0: i32) -> (i32, i32) {
    %c0_i32 = arith.constant 0 : i32
    %c0_i32_0 = arith.constant 0 : i32
    %c0_i32_1 = arith.constant 0 : i32
    return %c0_i32, %c0_i32_0 : i32, i32
  }
  func.func @transform_3(%arg0: i32) -> (i32, i32) {
    %c0_i32 = arith.constant 0 : i32
    %c0_i32_0 = arith.constant 0 : i32
    %c0_i32_1 = arith.constant 0 : i32
    return %c0_i32, %c0_i32_0 : i32, i32
  }
  func.func @transform_4(%arg0: i32) -> (i32, i32, i32) {
    %c0_i32 = arith.constant 0 : i32
    %c0_i32_0 = arith.constant 0 : i32
    %c0_i32_1 = arith.constant 0 : i32
    %c0_i32_2 = arith.constant 0 : i32
    return %c0_i32, %c0_i32_0, %c0_i32_1 : i32, i32, i32
  }
  func.func @transform_5(%arg0: i32) -> (i32, i32, i32) {
    %c0_i32 = arith.constant 0 : i32
    %c0_i32_0 = arith.constant 0 : i32
    %c0_i32_1 = arith.constant 0 : i32
    %c0_i32_2 = arith.constant 0 : i32
    return %c0_i32, %c0_i32_0, %c0_i32_1 : i32, i32, i32
  }
  func.func @transform_6(%arg0: i32) -> (i32, i32, i32) {
    %c0_i32 = arith.constant 0 : i32
    %c0_i32_0 = arith.constant 0 : i32
    %c0_i32_1 = arith.constant 0 : i32
    return %arg0, %c0_i32, %c0_i32_0 : i32, i32, i32
  }
  func.func @transform_7(%arg0: i32) -> (i32, i32, i32) {
    %c0_i32 = arith.constant 0 : i32
    %c0_i32_0 = arith.constant 0 : i32
    %c0_i32_1 = arith.constant 0 : i32
    return %arg0, %c0_i32, %c0_i32_0 : i32, i32, i32
  }
  func.func @transform_8(%arg0: i32) -> (i32, i32, i32) {
    %c0_i32 = arith.constant 0 : i32
    %c0_i32_0 = arith.constant 0 : i32
    %c0_i32_1 = arith.constant 0 : i32
    return %arg0, %c0_i32, %c0_i32_0 : i32, i32, i32
  }
}

</mosaic_0001>

<bundles_post_ra>
// kernel: tpu_custom_call.1
= control target key start
LH: loop header
LB: loop body
LE: loop exit
PB: predicated region body
PF: predicated region fallthrough
CT: control target
= control target key end

     0   :  { %14 = vsyncpa [#allocation3], 0  ;;  %s3236_s0 = inlined_call_operand.vmem [shape: f32[2,256,64], index: 0, kind: input, shape index: {}]   ;;  %s3237_s1 = inlined_call_operand.vmem [shape: f32[32,64], index: 1, kind: input, shape index: {}]   ;;  %s3238_s2 = inlined_call_operand.vmem [shape: f32[1,64], index: 2, kind: input, shape index: {}]   ;;  %s3239_s3 = inlined_call_operand.vmem [shape: f32[1,64], index: 3, kind: input, shape index: {}]   ;;  %s3240_s4 = inlined_call_operand.vmem [shape: bf16[3,64,64], index: 4, kind: input, shape index: {}]   ;;  %s3241_s5 = inlined_call_operand.vmem [shape: f32[3,1,64], index: 5, kind: input, shape index: {}]   ;;  %s3242_s6 = inlined_call_operand.vmem [shape: bf16[2,256,64], index: 6, kind: output, shape index: {0}]   ;;  %s3243_s7 = inlined_call_operand.hbm [shape: bf16[2,64,256], index: 7, kind: output, shape index: {1}]   ;;  %s3244_s8 = inlined_call_operand.vmem [shape: bf16[2,256,64], index: 8, kind: output, shape index: {2}]  }
   0x1   :  { %16 = vsyncpa [#allocation3 + $0x1], 0  ;;  %s2183_s27 = smov 0   ;;  %s2185_s28 = smov 0  }
   0x2   :  { %s2187_s29 = smov 0   ;;  %s2189_s30 = smov 0  }
   0x3 LB: > { %s2204_s9 = sadd.s32 4294967295, %s2134_s30   ;;  %s1713_s10 = sadd.s32 4294967294, %s2134_s30   ;;  %s2134_s30 = sphi %s2189_s30, %s3252_s30   ;;  %s2130_s29 = sphi %s2187_s29, %s3251_s29   ;;  %s2126_s28 = sphi %s2185_s28, %s3250_s28   ;;  %s2122_s27 = sphi %s2183_s27, %s3249_s27  }
   0x4   : > { %s2208_s11 = sadd.s32 1, %s2134_s30   ;;  %s186_s12 = sadd.s32 1, %s2130_s29 }
   0x5   : > { %s183_s13 = ssub.s32 %s2134_s30, %s2208_s11  ;;  %p196_p0 = scmp.ne.s32.totalorder %s2130_s29, %s2126_s28 }
   0x6   : > { %p184_p1 = scmp.eq.s32.totalorder %s183_s13, 0  ;;  %p197_p2 = scmp.eq.s32.totalorder %s2204_s9, 1 }
   0x7   : > { %p202_p3 = scmp.ne.s32.totalorder %s2126_s28, %s2122_s27  ;;  %p203_p4 = scmp.eq.s32.totalorder %s1713_s10, 1 }
   0x8   : > { %s2219_s14 = scalar_select %p184_p1, %s2130_s29, %s186_s12  }
   0x9   : > { %p2221_p5 = por %p197_p2, %p196_p0  ;;  %p2225_p6 = por %p203_p4, %p202_p3 }
   0xa   : > { %p1716_p7 = scmp.ge.s32.totalorder %s2134_s30, 1  ;;  %p270_p8 = scmp.lt.s32.totalorder %s2134_s30, 3 }
   0xc   : > { %p271_p9 = pnand %p1716_p7, %p270_p8 }
   0xd   : > { %p314_p10 = scmp.lt.s32.totalorder (!%p271_p9), %s2204_s9, 1 }
   0xe   : > { %274 = sbr.rel (%p271_p9) target bundleno = 690 (0x2b2), region = 44 }
  0x13   : > { %s2233_s17 = scalar_select %p314_p10, %s2204_s9, 1  ;;  %vm346_vm0 = vcmask 523264   ;;  %vm1025_vm13 = vcmask 519168  }
  0x15   : > { %s1909_s18 = sshll.u32 %s2233_s17, 8  ;;  %s1910_s26 = sshll.u32 %s2233_s17, 7 }
  0x16   : > { %s2239_s21 = scalar_lea.vmem %s3236_s0, %s1909_s18  ;;  %s2846_s13 = scalar_lea.vmem %s3242_s6, %s1910_s26 }
  0x17   : > { %v2242_v0 = vld [vmem:[%s2239_s21] sm:$0xff]  ;;  %v2245_v1 = vld [vmem:[%s2239_s21 + $0x8] sm:$0xff]  ;;  %v2248_v2 = vld [vmem:[%s2239_s21 + $0x10] sm:$0xff]  ;;  %s2989_s10 = scalar_lea.vmem %s3244_s8, %s1910_s26  ;;  %s304_s17 = sand.u32 1, %s2126_s28  }
  0x18   : > { %v2251_v3 = vld [vmem:[%s2239_s21 + $0x18] sm:$0xff]  ;;  %v347_v4 = vsel %vm346_vm0, %v2242_v0, 0.0  ;;  %v348_v5 = vsel %vm346_vm0, %v2245_v1, 0.0  ;;  %v350_v6 = vsel %vm346_vm0, %v2248_v2, 0.0  ;;  %v2260_v7 = vld [vmem:[%s2239_s21 + $0x20] sm:$0xff]  ;;  %v2265_v10 = vld [vmem:[%s2239_s21 + $0x28] sm:$0xff]  ;;  %v385_v39 = vmul.f32 %v2242_v0, %v2242_v0 }
  0x19   : > { %v349_v8 = vadd.f32 %v348_v5, %v347_v4  ;;  %v352_v9 = vsel %vm346_vm0, %v2251_v3, 0.0  ;;  %v354_v12 = vsel %vm346_vm0, %v2260_v7, 0.0  ;;  %v2270_v13 = vld [vmem:[%s2239_s21 + $0x80] sm:$0xff]  ;;  %v2273_v14 = vld [vmem:[%s2239_s21 + $0x88] sm:$0xff]  ;;  %v2276_v15 = vld [vmem:[%s2239_s21 + $0x30] sm:$0xff]  ;;  %v356_v21 = vsel %vm346_vm0, %v2265_v10, 0.0 }
  0x1a   : > { %v2279_v17 = vld [vmem:[%s2239_s21 + $0x90] sm:$0xff]  ;;  %v2282_v18 = vld [vmem:[%s2239_s21 + $0x98] sm:$0xff]  ;;  %v455_v19 = vsel %vm346_vm0, %v2270_v13, 0.0  ;;  %v456_v20 = vsel %vm346_vm0, %v2273_v14, 0.0  ;;  %v2291_v22 = vld [vmem:[%s2239_s21 + $0xa0] sm:$0xff]  ;;  %v358_v28 = vsel %vm346_vm0, %v2276_v15, 0.0  ;;  %v386_v44 = vmul.f32 %v2245_v1, %v2245_v1 }
  0x1b   : > { %v351_v11 = vadd.f32 %v350_v6, %v349_v8  ;;  %v457_v23 = vadd.f32 %v456_v20, %v455_v19  ;;  %v458_v24 = vsel %vm346_vm0, %v2279_v17, 0.0  ;;  %v2296_v25 = vld [vmem:[%s2239_s21 + $0x38] sm:$0xff]  ;;  %v460_v27 = vsel %vm346_vm0, %v2282_v18, 0.0  ;;  %v2303_v29 = vld [vmem:[%s2239_s21 + $0xa8] sm:$0xff]  ;;  %v2306_v31 = vld [vmem:[%s2239_s21 + $0x40] sm:$0xff]  ;;  %s1717_s26 = sshll.u32 %s304_s17, 6 }
  0x1c   : > { %v2309_v32 = vld [vmem:[%s2239_s21 + $0x48] sm:$0xff]  ;;  %v462_v34 = vsel %vm346_vm0, %v2291_v22, 0.0  ;;  %v2314_v35 = vld [vmem:[%s2239_s21 + $0x50] sm:$0xff]  ;;  %v360_v36 = vsel %vm346_vm0, %v2296_v25, 0.0  ;;  %v2324_v40 = vld [vmem:[%s2239_s21 + $0x58] sm:$0xff]  ;;  %v464_v43 = vsel %vm346_vm0, %v2303_v29, 0.0  ;;  %v387_v45 = vmul.f32 %v2248_v2, %v2248_v2 }
  0x1d   : > { %v353_v16 = vadd.f32 %v352_v9, %v351_v11  ;;  %v459_v30 = vadd.f32 %v458_v24, %v457_v23  ;;  %v2319_v37 = vld [vmem:[%s2239_s21 + $0xb0] sm:$0xff]  ;;  %v2327_v42 = vld [vmem:[%s2239_s21 + $0xb8] sm:$0xff]  ;;  %v362_v46 = vsel %vm346_vm0, %v2306_v31, 0.0  ;;  %v364_v47 = vsel %vm346_vm0, %v2309_v32, 0.0  ;;  %v2340_v49 = vld [vmem:[%s2239_s21 + $0x60] sm:$0xff]  ;;  %s3184_s22 = scalar_lea.vmem [#allocation2], %s1717_s26 }
  0x1e   : > { %v2343_v50 = vld [vmem:[%s2239_s21 + $0x68] sm:$0xff]  ;;  %v366_v52 = vsel %vm346_vm0, %v2314_v35, 0.0  ;;  %v466_v53 = vsel %vm346_vm0, %v2319_v37, 0.0  ;;  %v388_v54 = vmul.f32 %v2251_v3, %v2251_v3  ;;  %v368_v55 = vsel %vm346_vm0, %v2324_v40, 0.0  ;;  %v2354_v56 = vld [vmem:[%s2239_s21 + $0xc0] sm:$0xff]  ;;  %v2361_v60 = vld [vmem:[%s2239_s21 + $0x70] sm:$0xff] }
  0x1f   : > { %v355_v26 = vadd.f32 %v354_v12, %v353_v16  ;;  %v461_v38 = vadd.f32 %v460_v27, %v459_v30  ;;  %v468_v58 = vsel %vm346_vm0, %v2327_v42, 0.0  ;;  %v389_v59 = vmul.f32 %v2260_v7, %v2260_v7  ;;  %v2364_v61 = vld [vmem:[%s2239_s21 + $0x78] sm:$0xff]  ;;  %v2374_v9 = vld [vmem:[%s2239_s21 + $0xc8] sm:$0xff]  ;;  %v2377_v19 = vld [vmem:[%s2239_s21 + $0xd0] sm:$0xff]  ;;  %s1595_s25 = sshll.u32 %s3184_s22, 4  ;;  %s2092_s26 = scalar_lea.hbm %s3243_s7, 128  ;;  %s1596_s25 = int_to_ptr.vmem [resolvable:$true] %s1595_s25 }
  0x20   : > { %v401_v63 = vsel %vm346_vm0, %v385_v39, 0.0  ;;  %v402_v4 = vsel %vm346_vm0, %v386_v44, 0.0  ;;  %v404_v5 = vsel %vm346_vm0, %v387_v45, 0.0  ;;  %v370_v6 = vsel %vm346_vm0, %v2340_v49, 0.0  ;;  %v2380_v20 = vld [vmem:[%s2239_s21 + $0xd8] sm:$0xff] }
  0x21   : > { %v357_v33 = vadd.f32 %v356_v21, %v355_v26  ;;  %v463_v48 = vadd.f32 %v462_v34, %v461_v38  ;;  %v372_v8 = vsel %vm346_vm0, %v2343_v50, 0.0  ;;  %v403_v12 = vadd.f32 %v402_v4, %v401_v63  ;;  %v2398_v38 = vld [vmem:[%s2239_s21 + $0xf0] sm:$0xff] }
  0x22   : > { %v470_v21 = vsel %vm346_vm0, %v2354_v56, 0.0  ;;  %v390_v23 = vmul.f32 %v2265_v10, %v2265_v10  ;;  %v406_v24 = vsel %vm346_vm0, %v388_v54, 0.0  ;;  %v374_v26 = vsel %vm346_vm0, %v2361_v60, 0.0  ;;  %v2415_v54 = vld [vmem:[%s2239_s21 + $0xf8] sm:$0xff] }
  0x23   : > { %v359_v41 = vadd.f32 %v358_v28, %v357_v33  ;;  %v465_v57 = vadd.f32 %v464_v43, %v463_v48  ;;  %v376_v27 = vsel %vm346_vm0, %v2364_v61, 0.0  ;;  %v2392_v28 = vld [vmem:[%s2239_s21 + $0xe0] sm:$0xff]  ;;  %v405_v33 = vadd.f32 %v404_v5, %v403_v12 }
  0x24   : > { %v472_v39 = vsel %vm346_vm0, %v2374_v9, 0.0  ;;  %v408_v43 = vsel %vm346_vm0, %v389_v59, 0.0  ;;  %v474_v45 = vsel %vm346_vm0, %v2377_v19, 0.0  ;;  %v482_v59 = vsel %vm346_vm0, %v2398_v38, 0.0 }
  0x25   : > { %v361_v51 = vadd.f32 %v360_v36, %v359_v41  ;;  %v467_v11 = vadd.f32 %v466_v53, %v465_v57  ;;  %v2395_v36 = vld [vmem:[%s2239_s21 + $0xe8] sm:$0xff]  ;;  %v391_v41 = vmul.f32 %v2276_v15, %v2276_v15  ;;  %v410_v53 = vsel %vm346_vm0, %v390_v23, 0.0 }
  0x26   : > { %v493_v5 = vmul.f32 %v2270_v13, %v2270_v13 }
  0x27   : > { %v363_v62 = vadd.f32 %v362_v46, %v361_v51  ;;  %v469_v30 = vadd.f32 %v468_v58, %v467_v11  ;;  %v476_v46 = vsel %vm346_vm0, %v2380_v20, 0.0  ;;  %v478_v51 = vsel %vm346_vm0, %v2392_v28, 0.0 }
  0x28   : > { %v480_v58 = vsel %vm346_vm0, %v2395_v36, 0.0  ;;  %v412_v4 = vsel %vm346_vm0, %v391_v41, 0.0  ;;  %v496_v41 = vmul.f32 %v2282_v18, %v2282_v18 }
  0x29   : > { %v365_v16 = vadd.f32 %v364_v47, %v363_v62  ;;  %v471_v44 = vadd.f32 %v470_v21, %v469_v30  ;;  %v407_v47 = vadd.f32 %v406_v24, %v405_v33  ;;  %v495_v21 = vmul.f32 %v2279_v17, %v2279_v17 }
  0x2a   : > { %v394_v24 = vmul.f32 %v2309_v32, %v2309_v32 }
  0x2b   : > { %v367_v34 = vadd.f32 %v366_v52, %v365_v16  ;;  %v392_v52 = vmul.f32 %v2296_v25, %v2296_v25  ;;  %v473_v57 = vadd.f32 %v472_v39, %v471_v44  ;;  %v409_v62 = vadd.f32 %v408_v43, %v407_v47 }
  0x2c   : > { %v494_v16 = vmul.f32 %v2273_v14, %v2273_v14 }
  0x2d   : > { %v369_v48 = vadd.f32 %v368_v55, %v367_v34  ;;  %v393_v55 = vmul.f32 %v2306_v31, %v2306_v31  ;;  %v475_v11 = vadd.f32 %v474_v45, %v473_v57  ;;  %v411_v12 = vadd.f32 %v410_v53, %v409_v62 }
  0x2e   : > { %v414_v30 = vsel %vm346_vm0, %v392_v52, 0.0  ;;  %v395_v34 = vmul.f32 %v2314_v35, %v2314_v35  ;;  %v509_v45 = vsel %vm346_vm0, %v493_v5, 0.0  ;;  %v510_v52 = vsel %vm346_vm0, %v494_v16, 0.0 }
  0x2f   : > { %v371_v63 = vadd.f32 %v370_v6, %v369_v48  ;;  %v484_v6 = vsel %vm346_vm0, %v2415_v54, 0.0  ;;  %v477_v33 = vadd.f32 %v476_v46, %v475_v11  ;;  %v413_v39 = vadd.f32 %v412_v4, %v411_v12 }
  0x30   : > { %v416_v44 = vsel %vm346_vm0, %v393_v55, 0.0  ;;  %v512_v46 = vsel %vm346_vm0, %v495_v21, 0.0  ;;  %v396_v57 = vmul.f32 %v2324_v40, %v2324_v40  ;;  %v418_v62 = vsel %vm346_vm0, %v394_v24, 0.0 }
  0x31   : > { %v373_v23 = vadd.f32 %v372_v8, %v371_v63  ;;  %v497_v8 = vmul.f32 %v2291_v22, %v2291_v22  ;;  %v479_v47 = vadd.f32 %v478_v51, %v477_v33  ;;  %v415_v48 = vadd.f32 %v414_v30, %v413_v39 }
  0x32   : > { %v498_v4 = vmul.f32 %v2303_v29, %v2303_v29  ;;  %v514_v5 = vsel %vm346_vm0, %v496_v41, 0.0  ;;  %v397_v11 = vmul.f32 %v2340_v49, %v2340_v49  ;;  %v420_v12 = vsel %vm346_vm0, %v395_v34, 0.0 }
  0x33   : > { %v375_v43 = vadd.f32 %v374_v26, %v373_v23  ;;  %v511_v26 = vadd.f32 %v510_v52, %v509_v45  ;;  %v481_v63 = vadd.f32 %v480_v58, %v479_v47  ;;  %v417_v55 = vadd.f32 %v416_v44, %v415_v48 }
  0x34   : > { %v499_v23 = vmul.f32 %v2319_v37, %v2319_v37  ;;  %v516_v58 = vsel %vm346_vm0, %v497_v8, 0.0  ;;  %v398_v30 = vmul.f32 %v2343_v50, %v2343_v50  ;;  %v422_v33 = vsel %vm346_vm0, %v396_v57, 0.0 }
  0x35   : > { %v377_v53 = vadd.f32 %v376_v27, %v375_v43  ;;  %v513_v27 = vadd.f32 %v512_v46, %v511_v26  ;;  %v483_v16 = vadd.f32 %v482_v59, %v481_v63  ;;  %v419_v21 = vadd.f32 %v418_v62, %v417_v55 }
  0x36   : > { %v500_v34 = vmul.f32 %v2327_v42, %v2327_v42  ;;  %v518_v59 = vsel %vm346_vm0, %v498_v4, 0.0  ;;  %v399_v45 = vmul.f32 %v2361_v60, %v2361_v60  ;;  %v424_v8 = vsel %vm346_vm0, %v397_v11, 0.0 }
  0x37   : > { %v378_v51 = vrot.slane %v377_v53, 4  ;;  %v515_v39 = vadd.f32 %v514_v5, %v513_v27  ;;  %v485_v41 = vadd.f32 %v484_v6, %v483_v16  ;;  %v421_v43 = vadd.f32 %v420_v12, %v419_v21 }
  0x38   : > { %v501_v46 = vmul.f32 %v2354_v56, %v2354_v56  ;;  %v520_v6 = vsel %vm346_vm0, %v499_v23, 0.0  ;;  %v400_v57 = vmul.f32 %v2364_v61, %v2364_v61  ;;  %v426_v62 = vsel %vm346_vm0, %v398_v30, 0.0 }
  0x39   : > { %v379_v24 = vadd.f32 %v378_v51, %v377_v53  ;;  %v517_v47 = vadd.f32 %v516_v58, %v515_v39  ;;  %v486_v48 = vrot.slane %v485_v41, 4  ;;  %v423_v52 = vadd.f32 %v422_v33, %v421_v43 }
  0x3a   : > { %v502_v4 = vmul.f32 %v2374_v9, %v2374_v9  ;;  %v522_v5 = vsel %vm346_vm0, %v500_v34, 0.0  ;;  %v428_v51 = vsel %vm346_vm0, %v399_v45, 0.0  ;;  %v503_v11 = vmul.f32 %v2377_v19, %v2377_v19 }
  0x3b   : > { %v380_v44 = vrot.slane %v379_v24, 2  ;;  %v519_v26 = vadd.f32 %v518_v59, %v517_v47  ;;  %v487_v63 = vadd.f32 %v486_v48, %v485_v41  ;;  %v425_v55 = vadd.f32 %v424_v8, %v423_v52 }
  0x3c   : > { %v524_v23 = vsel %vm346_vm0, %v501_v46, 0.0  ;;  %v430_v58 = vsel %vm346_vm0, %v400_v57, 0.0  ;;  %v504_v39 = vmul.f32 %v2380_v20, %v2380_v20  ;;  %v526_v41 = vsel %vm346_vm0, %v502_v4, 0.0  ;;  %v2492_v20 = vld [vmem:[%s3237_s1 + $0x10] sm:$0xff] }
  0x3d   : > { %v381_v53 = vadd.f32 %v380_v44, %v379_v24  ;;  %v521_v12 = vadd.f32 %v520_v6, %v519_v26  ;;  %v488_v16 = vrot.slane %v487_v63, 2  ;;  %v427_v21 = vadd.f32 %v426_v62, %v425_v55 }
  0x3e   : > { %v505_v43 = vmul.f32 %v2392_v28, %v2392_v28  ;;  %v528_v45 = vsel %vm346_vm0, %v503_v11, 0.0  ;;  %v506_v48 = vmul.f32 %v2395_v36, %v2395_v36  ;;  %v530_v52 = vsel %vm346_vm0, %v504_v39, 0.0  ;;  %v2497_v28 = vld [vmem:[%s3237_s1] sm:$0xff] }
  0x3f   : > { %v382_v27 = vrot.slane %v381_v53, 1  ;;  %v523_v24 = vadd.f32 %v522_v5, %v521_v12  ;;  %v489_v30 = vadd.f32 %v488_v16, %v487_v63  ;;  %v429_v33 = vadd.f32 %v428_v51, %v427_v21  ;;  %v2513_v16 = vld [vmem:[%s3237_s1 + $0x8] sm:$0xff] }
  0x40   : > { %v507_v57 = vmul.f32 %v2398_v38, %v2398_v38  ;;  %v532_v36 = vsel %vm346_vm0, %v505_v43, 0.0  ;;  %v508_v55 = vmul.f32 %v2415_v54, %v2415_v54  ;;  %v534_v4 = vsel %vm346_vm0, %v506_v48, 0.0 }
  0x41   : > { %v525_v19 = vadd.f32 %v524_v23, %v523_v24  ;;  %v383_v34 = vadd.f32 %v382_v27, %v381_v53  ;;  %v490_v59 = vrot.slane %v489_v30, 1  ;;  %v431_v44 = vadd.f32 %v430_v58, %v429_v33 }
  0x42   : > { %v536_v38 = vsel %vm346_vm0, %v507_v57, 0.0  ;;  %v538_v54 = vsel %vm346_vm0, %v508_v55, 0.0 }
  0x43   : > { %v527_v8 = vadd.f32 %v526_v41, %v525_v19  ;;  %v491_v47 = vadd.f32 %v490_v59, %v489_v30  ;;  %v432_v46 = vrot.slane %v431_v44, 4 }
  0x45   : > { %v529_v6 = vadd.f32 %v528_v45, %v527_v8  ;;  %v492_v53 = vadd.f32 %v491_v47, %v383_v34  ;;  %v433_v5 = vadd.f32 %v432_v46, %v431_v44  ;;  %v2524_v46 = vld [vmem:[%s3237_s1 + $0x18] sm:$0xff] }
  0x47   : > { %v531_v62 = vadd.f32 %v530_v52, %v529_v6  ;;  %v553_v26 = vmul.f32 %v2492_v20, %v492_v53  ;;  %v551_v63 = vmul.f32 %v2497_v28, %v492_v53  ;;  %v552_v21 = vmul.f32 %v2513_v16, %v492_v53 }
  0x48   : > { %v434_v23 = vrot.slane %v433_v5, 2 }
  0x49   : > { %v533_v51 = vadd.f32 %v532_v36, %v531_v62  ;;  %v561_v11 = vsel %vm346_vm0, %v553_v26, 0.0  ;;  %v555_v12 = vsel %vm346_vm0, %v551_v63, 0.0  ;;  %v558_v30 = vsel %vm346_vm0, %v552_v21, 0.0 }
  0x4a   : > { %562 = vadd.xlane.f32.xlu1 %v561_v11  ;;  %556 = vadd.xlane.f32.xlu0 %v555_v12  ;;  %v435_v33 = vadd.f32 %v434_v23, %v433_v5  ;;  %v554_v62 = vmul.f32 %v2524_v46, %v492_v53 }
  0x4b   : > { %v535_v27 = vadd.f32 %v534_v4, %v533_v51 }
  0x4c   : > { %v436_v43 = vrot.slane %v435_v33, 1  ;;  %v564_v63 = vsel %vm346_vm0, %v554_v62, 0.0 }
  0x4d   : > { %v537_v58 = vadd.f32 %v536_v38, %v535_v27 }
  0x4e   : > { %v437_v59 = vadd.f32 %v436_v43, %v435_v33 }
  0x4f   : > { %v539_v24 = vadd.f32 %v538_v54, %v537_v58 }
  0x51   : > { %v540_v39 = vrot.slane %v539_v24, 4 }
  0x52   : > { %559 = vadd.xlane.f32.xlu0 %v558_v30 }
  0x53   : > { %v541_v41 = vadd.f32 %v540_v39, %v539_v24 }
  0x55   : > { %v542_v19 = vrot.slane %v541_v41, 2 }
  0x57   : > { %v543_v34 = vadd.f32 %v542_v19, %v541_v41 }
  0x59   : > { %v544_v44 = vrot.slane %v543_v34, 1 }
  0x5b   : > { %v545_v45 = vadd.f32 %v544_v44, %v543_v34 }
  0x5d   : > { %v546_v8 = vadd.f32 %v545_v45, %v437_v59 }
  0x5f   : > { %v568_v47 = vmul.f32 %v2513_v16, %v546_v8  ;;  %v567_v48 = vmul.f32 %v2497_v28, %v546_v8  ;;  %v569_v52 = vmul.f32 %v2492_v20, %v546_v8  ;;  %v570_v26 = vmul.f32 %v2524_v46, %v546_v8 }
  0x61   : > { %v574_v6 = vsel %vm346_vm0, %v568_v47, 0.0  ;;  %v571_v57 = vsel %vm346_vm0, %v567_v48, 0.0  ;;  %v577_v36 = vsel %vm346_vm0, %v569_v52, 0.0  ;;  %v580_v55 = vsel %vm346_vm0, %v570_v26, 0.0 }
  0x62   : > { %575 = vadd.xlane.f32.xlu2 %v574_v6  ;;  %572 = vadd.xlane.f32.xlu1 %v571_v57 }
  0x63   : > { %578 = vadd.xlane.f32.xlu0 %v577_v36 }
  0x6a   : > { %565 = vadd.xlane.f32.xlu2 %v564_v63  ;;  %581 = vadd.xlane.f32.xlu1 %v580_v55 }
  0xbd   : > { %v557_v4 = vpop.xlane.xlu0 %556  ;;  %v563_v5 = vpop.xlane.xlu1 %562 }
  0xbe   : > { %v583_v12 = vmul.f32 0.001953125, %v557_v4  ;;  %v585_v38 = vmul.f32 0.001953125, %v563_v5 }
  0xc0   : > { %v591_v23 = vmul.f32 %v583_v12, %v583_v12  ;;  %v593_v30 = vmul.f32 %v585_v38, %v585_v38  ;;  %v643_v63 = vmul.f32 %v583_v12, %v2497_v28  ;;  %v1915_v12 = vld [vmem:[%s3240_s4 + $0x18] sm:$0xff] }
  0xc1   : > { %790 = vmatpush.bf16.msra.mxu0 %v1915_v12  ;;  %1937 = vmatpush.bf16.msra.mxu2 %v1915_v12 }
  0xc5   : > { %v560_v51 = vpop.xlane.xlu0 %559 }
  0xc6   : > { %v584_v11 = vmul.f32 0.001953125, %v560_v51 }
  0xc8   : > { %v592_v27 = vmul.f32 %v584_v11, %v584_v11  ;;  %v644_v6 = vmul.f32 %v584_v11, %v2513_v16  ;;  %v645_v11 = vmul.f32 %v585_v38, %v2492_v20 }
  0xd5   : > { %v576_v54 = vpop.xlane.xlu2 %575  ;;  %v573_v21 = vpop.xlane.xlu1 %572 }
  0xd6   : > { %v588_v53 = vmul.f32 0.001953125, %v576_v54  ;;  %v587_v58 = vmul.f32 0.001953125, %v573_v21  ;;  %v579_v24 = vpop.xlane.xlu0 %578  ;;  %v648_v54 = vsel %vm346_vm0, %v644_v6, 0.0 }
  0xd7   : > { %v589_v33 = vmul.f32 0.001953125, %v579_v24  ;;  %v1919_v24 = vld [vmem:[%s3240_s4 + $0x38] sm:$0xff] }
  0xd8   : > { %v595_v39 = vsub.f32 %v587_v58, %v591_v23  ;;  %v596_v41 = vsub.f32 %v588_v53, %v592_v27  ;;  %v647_v53 = vsel %vm346_vm0, %v643_v63, 0.0  ;;  %877 = vmatpush.bf16.msra.mxu1 %v1919_v24  ;;  %1941 = vmatpush.bf16.msra.mxu3 %v1919_v24 }
  0xd9   : > { %v597_v43 = vsub.f32 %v589_v33, %v593_v30  ;;  %v649_v33 = vadd.f32 %v648_v54, %v647_v53  ;;  %v1912_v53 = vld [vmem:[%s3240_s4] sm:$0xff] }
  0xda   : > { %v599_v19 = vadd.f32 1e-06, %v595_v39  ;;  %v600_v34 = vadd.f32 1e-06, %v596_v41 }
  0xdb   : > { %v2533_v59 = vadd.f32 1e-06, %v597_v43 }
  0xdc   : > { %2064 = vrsqrt.f32 %v599_v19  ;;  %vm609_vm3 = vweird.f32 %v599_v19  ;;  %vm619_vm5 = vweird.f32 %v600_v34 }
  0xdd   : > { %2066 = vrsqrt.f32 %v600_v34  ;;  %v566_v44 = vpop.xlane.xlu2 %565  ;;  %v582_v45 = vpop.xlane.xlu1 %581  ;;  %vm629_vm8 = vweird.f32 %v2533_v59 }
  0xde   : > { %v586_v8 = vmul.f32 0.001953125, %v566_v44  ;;  %v590_v47 = vmul.f32 0.001953125, %v582_v45  ;;  %2068 = vrsqrt.f32 %v2533_v59 }
  0xe0   : > { %v594_v48 = vmul.f32 %v586_v8, %v586_v8  ;;  %v646_v43 = vmul.f32 %v586_v8, %v2524_v46  ;;  %v1914_v8 = vld [vmem:[%s3240_s4 + $0x10] sm:$0xff] }
  0xe1   : > { %791 = vmatpush.bf16.msra.mxu0 %v1914_v8  ;;  %1938 = vmatpush.bf16.msra.mxu2 %v1914_v8 }
  0xe2   : > { %v2065_v52 = vpop.eup %2064  ;;  %v598_v57 = vsub.f32 %v590_v47, %v594_v48  ;;  %v650_v47 = vsel %vm346_vm0, %v645_v11, 0.0 }
  0xe3   : > { %v2067_v36 = vpop.eup %2066  ;;  %v604_v62 = vmul.f32 %v2065_v52, %v599_v19  ;;  %vm610_vm1 = vweird.f32 %v2065_v52  ;;  %v1918_v19 = vld [vmem:[%s3240_s4 + $0x30] sm:$0xff] }
  0xe4   : > { %v2069_v26 = vpop.eup %2068  ;;  %v614_v55 = vmul.f32 %v2067_v36, %v600_v34  ;;  %v2538_v4 = vadd.f32 1e-06, %v598_v57  ;;  %vm620_vm2 = vweird.f32 %v2067_v36  ;;  %vm2554_vm4 = vmor %vm609_vm3, %vm610_vm1  ;;  %v652_v34 = vsel %vm346_vm0, %v646_v43, 0.0  ;;  %878 = vmatpush.bf16.msra.mxu1 %v1918_v19  ;;  %1942 = vmatpush.bf16.msra.mxu3 %v1918_v19 }
  0xe5   : > { %v605_v5 = vmul.f32 %v2065_v52, %v604_v62  ;;  %v624_v51 = vmul.f32 %v2069_v26, %v2533_v59  ;;  %vm630_vm6 = vweird.f32 %v2069_v26  ;;  %vm621_vm7 = vmor %vm619_vm5, %vm620_vm2  ;;  %v651_v62 = vadd.f32 %v650_v47, %v649_v33  ;;  %v1931_v33 = vld [vmem:[%s3240_s4 + $0x38] sm:$0xff] }
  0xe6   : > { %v615_v27 = vmul.f32 %v2067_v36, %v614_v55  ;;  %2070 = vrsqrt.f32 %v2538_v4  ;;  %vm631_vm9 = vmor %vm629_vm8, %vm630_vm6  ;;  %vm639_vm11 = vweird.f32 %v2538_v4 }
  0xe7   : > { %v606_v21 = vmul.f32 0.5, %v605_v5  ;;  %v625_v23 = vmul.f32 %v2069_v26, %v624_v51 }
  0xe8   : > { %v616_v58 = vmul.f32 0.5, %v615_v27 }
  0xe9   : > { %v607_v30 = vsub.f32 1.5, %v606_v21  ;;  %v626_v39 = vmul.f32 0.5, %v625_v23  ;;  %v653_v21 = vadd.f32 %v652_v34, %v651_v62 }
  0xea   : > { %v617_v41 = vsub.f32 1.5, %v616_v58 }
  0xeb   : > { %v608_v38 = vmul.f32 %v2065_v52, %v607_v30  ;;  %v627_v44 = vsub.f32 1.5, %v626_v39  ;;  %v654_v12 = vrot.slane %v653_v21, 4 }
  0xec   : > { %v2071_v45 = vpop.eup %2070  ;;  %v618_v6 = vmul.f32 %v2067_v36, %v617_v41 }
  0xed   : > { %v612_v57 = vsel %vm2554_vm4, %v2065_v52, %v608_v38  ;;  %v634_v63 = vmul.f32 %v2071_v45, %v2538_v4  ;;  %v628_v5 = vmul.f32 %v2069_v26, %v627_v44  ;;  %v1913_v52 = vld [vmem:[%s3240_s4 + $0x8] sm:$0xff]  ;;  %vm640_vm10 = vweird.f32 %v2071_v45 }
  0xee   : > { %v622_v55 = vsel %vm621_vm7, %v2067_v36, %v618_v6  ;;  %v1917_v36 = vld [vmem:[%s3240_s4 + $0x28] sm:$0xff]  ;;  %v660_v54 = vmul.f32 %v612_v57, %v2497_v28  ;;  %792 = vmatpush.bf16.msra.mxu0 %v1913_v52  ;;  %1939 = vmatpush.bf16.msra.mxu2 %v1913_v52  ;;  %v1916_v28 = vld [vmem:[%s3240_s4 + $0x20] sm:$0xff]  ;;  %vm641_vm12 = vmor %vm639_vm11, %vm640_vm10  ;;  %v655_v38 = vadd.f32 %v654_v12, %v653_v21 }
  0xef   : > { %v661_v51 = vmul.f32 %v622_v55, %v2513_v16  ;;  %v635_v27 = vmul.f32 %v2071_v45, %v634_v63  ;;  %v632_v59 = vsel %vm631_vm9, %v2069_v26, %v628_v5  ;;  %879 = vmatpush.bf16.msra.mxu1 %v1917_v36  ;;  %1943 = vmatpush.bf16.msra.mxu3 %v1917_v36 }
  0xf0   : > { %v662_v16 = vmul.f32 %v632_v59, %v2492_v20  ;;  %v664_v26 = vsel %vm346_vm0, %v660_v54, 0.0  ;;  %v656_v4 = vrot.slane %v655_v38, 2 }
  0xf1   : > { %v636_v23 = vmul.f32 0.5, %v635_v27  ;;  %v665_v11 = vsel %vm346_vm0, %v661_v51, 0.0  ;;  %v679_v51 = vld [vmem:[%s3239_s3] sm:$0x1] }
  0xf2   : > { %v667_v20 = vsel %vm346_vm0, %v662_v16, 0.0  ;;  %v666_v30 = vadd.f32 %v665_v11, %v664_v26  ;;  %793 = vmatpush.bf16.msra.mxu0 %v1912_v53  ;;  %1940 = vmatpush.bf16.msra.mxu2 %v1912_v53  ;;  %v657_v8 = vadd.f32 %v656_v4, %v655_v38 }
  0xf3   : > { %v637_v58 = vsub.f32 1.5, %v636_v23  ;;  %880 = vmatpush.bf16.msra.mxu1 %v1916_v28  ;;  %1944 = vmatpush.bf16.msra.mxu3 %v1916_v28 }
  0xf4   : > { %v668_v41 = vadd.f32 %v667_v20, %v666_v30  ;;  %v658_v62 = vrot.slane %v657_v8, 1 }
  0xf5   : > { %v638_v24 = vmul.f32 %v2071_v45, %v637_v58 }
  0xf6   : > { %1327 = vmatpush.bf16.msrb.mxu0 %v1931_v33  ;;  %v659_v34 = vadd.f32 %v658_v62, %v657_v8  ;;  %v1134_v8 = vld [vmem:[%s2239_s21 + $0xe0] sm:$0xff] }
  0xf7   : > { %v642_v39 = vsel %vm641_vm12, %v2071_v45, %v638_v24  ;;  %v677_v45 = vld [vmem:[%s3238_s2] sm:$0x1] }
  0xf8   : > { %v663_v43 = vmul.f32 %v642_v39, %v2524_v46  ;;  %v1930_v46 = vld [vmem:[%s3240_s4 + $0x30] sm:$0xff] }
  0xfa   : > { %v669_v44 = vsel %vm346_vm0, %v663_v43, 0.0  ;;  %1328 = vmatpush.bf16.msrb.mxu0 %v1930_v46  ;;  %v1132_v43 = vld [vmem:[%s2239_s21 + $0xd0] sm:$0xff]  ;;  %v1137_v46 = vld [vmem:[%s2239_s21 + $0xf8] sm:$0xff] }
  0xfb   : > { %v670_v47 = vadd.f32 %v669_v44, %v668_v41 }
  0xfd   : > { %v671_v48 = vrot.slane %v670_v47, 4 }
  0xff   : > { %v672_v6 = vadd.f32 %v671_v48, %v670_v47  ;;  %v1133_v47 = vld [vmem:[%s2239_s21 + $0xd8] sm:$0xff] }
 0x101   : > { %v673_v19 = vrot.slane %v672_v6, 2 }
 0x103   : > { %v674_v57 = vadd.f32 %v673_v19, %v672_v6  ;;  %v1135_v19 = vld [vmem:[%s2239_s21 + $0xe8] sm:$0xff] }
 0x105   : > { %v675_v63 = vrot.slane %v674_v57, 1 }
 0x107   : > { %v676_v55 = vadd.f32 %v675_v63, %v674_v57 }
 0x109   : > { %v678_v5 = vmul.f32 %v677_v45, %v676_v55  ;;  %v1136_v45 = vld [vmem:[%s2239_s21 + $0xf0] sm:$0xff] }
 0x10b   : > { %v680_v27 = vmul.f32 %v678_v5, %v659_v34  ;;  %v2604_v52 = vperm.slane %v678_v5, 0 }
 0x10d   : > { %v681_v36 = vsub.f32 %v679_v51, %v680_v27  ;;  %v683_v54 = vmul.f32 %v2604_v52, %v2242_v0  ;;  %v684_v21 = vmul.f32 %v2604_v52, %v2245_v1  ;;  %v691_v23 = vmul.f32 %v2604_v52, %v2306_v31 }
 0x10e   : > { %v692_v16 = vmul.f32 %v2604_v52, %v2309_v32  ;;  %v685_v1 = vmul.f32 %v2604_v52, %v2248_v2  ;;  %v686_v31 = vmul.f32 %v2604_v52, %v2251_v3  ;;  %v693_v32 = vmul.f32 %v2604_v52, %v2314_v35  ;;  %v1929_v2 = vld [vmem:[%s3240_s4 + $0x28] sm:$0xff] }
 0x10f   : > { %v2608_v59 = vperm.slane %v681_v36, 0  ;;  %v694_v20 = vmul.f32 %v2604_v52, %v2324_v40  ;;  %v1138_v24 = vmul.f32 %v2604_v52, %v2270_v13  ;;  %v1139_v30 = vmul.f32 %v2604_v52, %v2273_v14  ;;  %1329 = vmatpush.bf16.msrb.mxu0 %v1929_v2 }
 0x110   : > { %v1140_v3 = vmul.f32 %v2604_v52, %v2279_v17  ;;  %v1141_v33 = vmul.f32 %v2604_v52, %v2282_v18  ;;  %v1142_v39 = vmul.f32 %v2604_v52, %v2291_v22  ;;  %v1143_v17 = vmul.f32 %v2604_v52, %v2303_v29 }
 0x111   : > { %v702_v11 = vadd.f32 %v2608_v59, %v683_v54  ;;  %v703_v53 = vadd.f32 %v2608_v59, %v684_v21  ;;  %v710_v58 = vadd.f32 %v2608_v59, %v691_v23  ;;  %v711_v28 = vadd.f32 %v2608_v59, %v692_v16 }
 0x112   : > { %v704_v12 = vadd.f32 %v2608_v59, %v685_v1  ;;  %v705_v35 = vadd.f32 %v2608_v59, %v686_v31  ;;  %v712_v40 = vadd.f32 %v2608_v59, %v693_v32  ;;  %v1154_v13 = vadd.f32 %v1138_v24, %v2608_v59  ;;  %v1923_v24 = vld [vmem:[%s3240_s4 + $0x58] sm:$0xff] }
 0x113   : > { %v2620_v0 = vpack.c.bf16 %v703_v53, %v702_v11  ;;  %v2622_v26 = vpack.c.bf16 %v711_v28, %v710_v58  ;;  %v1155_v14 = vadd.f32 %v1139_v30, %v2608_v59  ;;  %v1156_v41 = vadd.f32 %v1140_v3, %v2608_v59  ;;  %v1927_v30 = vld [vmem:[%s3240_s4 + $0x18] sm:$0xff]  ;;  %964 = vmatpush.bf16.msrb.mxu2 %v1923_v24 }
 0x114   : > { %v713_v38 = vadd.f32 %v2608_v59, %v694_v20  ;;  %v1157_v18 = vadd.f32 %v1141_v33, %v2608_v59  ;;  %v1158_v44 = vadd.f32 %v1142_v39, %v2608_v59  ;;  %v1144_v22 = vmul.f32 %v2604_v52, %v2319_v37  ;;  %v1935_v3 = vld [vmem:[%s3240_s4 + $0x58] sm:$0xff]  ;;  %1242 = vmatpush.bf16.msrb.mxu3 %v1927_v30  ;;  %v1934_v33 = vld [vmem:[%s3240_s4 + $0x50] sm:$0xff] }
 0x115   : > { %1740 = vmatmul.msk.bf16.vlgmr.msra.gmra.mxu0 %vm346_vm0, %v2620_v0  ;;  %1744 = vmatmul.msk.bf16.vlgmr.msra.gmra.mxu2 %vm346_vm0, %v2622_v26  ;;  %v2668_v4 = vpack.c.bf16 %v1155_v14, %v1154_v13  ;;  %v1159_v48 = vadd.f32 %v1143_v17, %v2608_v59  ;;  %v1145_v29 = vmul.f32 %v2604_v52, %v2327_v42  ;;  %v1921_v13 = vld [vmem:[%s3240_s4 + $0x48] sm:$0xff] }
 0x116   : > { %1773 = vmatmul.msk.bf16.vlgmr.msra.gmra.mxu1 %vm346_vm0, %v2620_v0  ;;  %1777 = vmatmul.msk.bf16.vlgmr.msra.gmra.mxu3 %vm346_vm0, %v2622_v26  ;;  %v1146_v6 = vmul.f32 %v2604_v52, %v2354_v56  ;;  %v2677_v57 = vpack.c.bf16 %v1157_v18, %v1156_v41  ;;  %v1160_v62 = vadd.f32 %v1144_v22, %v2608_v59 }
 0x117   : > { %v1147_v37 = vmul.f32 %v2604_v52, %v2374_v9  ;;  %v1148_v63 = vmul.f32 %v1132_v43, %v2604_v52  ;;  %v2685_v55 = vpack.c.bf16 %v1159_v48, %v1158_v44  ;;  %v1161_v42 = vadd.f32 %v1145_v29, %v2608_v59  ;;  %1412 = vmatpush.bf16.msrb.mxu1 %v1935_v3  ;;  %v1933_v43 = vld [vmem:[%s3240_s4 + $0x48] sm:$0xff]  ;;  %v1932_v48 = vld [vmem:[%s3240_s4 + $0x40] sm:$0xff] }
 0x118   : > { %v1162_v34 = vadd.f32 %v1146_v6, %v2608_v59  ;;  %v1149_v56 = vmul.f32 %v1133_v47, %v2604_v52  ;;  %v1150_v27 = vmul.f32 %v1134_v8, %v2604_v52  ;;  %v1151_v9 = vmul.f32 %v1135_v19, %v2604_v52  ;;  %v1924_v47 = vld [vmem:[%s3240_s4] sm:$0xff] }
 0x119   : > { %v1163_v5 = vadd.f32 %v1147_v37, %v2608_v59  ;;  %v1164_v51 = vadd.f32 %v1148_v63, %v2608_v59  ;;  %v2694_v36 = vpack.c.bf16 %v1161_v42, %v1160_v62  ;;  %v1152_v21 = vmul.f32 %v1136_v45, %v2604_v52 }
 0x11a   : > { %v1165_v54 = vadd.f32 %v1149_v56, %v2608_v59  ;;  %v1153_v23 = vmul.f32 %v1137_v46, %v2604_v52  ;;  %v1166_v11 = vadd.f32 %v1150_v27, %v2608_v59  ;;  %v1167_v53 = vadd.f32 %v1151_v9, %v2608_v59 }
 0x11b   : > { %v2699_v16 = vpack.c.bf16 %v1163_v5, %v1162_v34  ;;  %v1168_v28 = vadd.f32 %v1152_v21, %v2608_v59  ;;  %v2709_v32 = vpack.c.bf16 %v705_v35, %v704_v12  ;;  %v2711_v20 = vpack.c.bf16 %v713_v38, %v712_v40  ;;  %v1928_v12 = vld [vmem:[%s3240_s4 + $0x20] sm:$0xff]  ;;  %v1922_v35 = vld [vmem:[%s3240_s4 + $0x50] sm:$0xff]  ;;  %1413 = vmatpush.bf16.msrb.mxu1 %v1934_v33 }
 0x11c   : > { %v2703_v58 = vpack.c.bf16 %v1165_v54, %v1164_v51  ;;  %v1169_v1 = vadd.f32 %v1153_v23, %v2608_v59  ;;  %v2707_v31 = vpack.c.bf16 %v1167_v53, %v1166_v11  ;;  %1330 = vmatpush.bf16.msrb.mxu0 %v1928_v12  ;;  %v1926_v40 = vld [vmem:[%s3240_s4 + $0x10] sm:$0xff]  ;;  %v687_v39 = vmul.f32 %v2604_v52, %v2260_v7  ;;  %v1925_v7 = vld [vmem:[%s3240_s4 + $0x8] sm:$0xff] }
 0x11d   : > { %965 = vmatpush.bf16.msrb.mxu2 %v1922_v35  ;;  %v688_v14 = vmul.f32 %v2604_v52, %v2265_v10  ;;  %v695_v41 = vmul.f32 %v2604_v52, %v2340_v49  ;;  %v696_v17 = vmul.f32 %v2604_v52, %v2343_v50  ;;  %1243 = vmatpush.bf16.msrb.mxu3 %v1926_v40  ;;  %v1920_v50 = vld [vmem:[%s3240_s4 + $0x40] sm:$0xff] }
 0x11e   : > { %v2713_v2 = vpack.c.bf16 %v1169_v1, %v1168_v28  ;;  %v706_v38 = vadd.f32 %v2608_v59, %v687_v39  ;;  %v689_v29 = vmul.f32 %v2604_v52, %v2276_v15  ;;  %v690_v6 = vmul.f32 %v2604_v52, %v2296_v25  ;;  %v2835_v15 = vld [vmem:[%s3241_s5] ss:$0 sm:$0xff] }
 0x11f   : > { %v707_v10 = vadd.f32 %v2608_v59, %v688_v14  ;;  %v714_v18 = vadd.f32 %v2608_v59, %v695_v41  ;;  %v715_v49 = vadd.f32 %v2608_v59, %v696_v17  ;;  %1414 = vmatpush.bf16.msrb.mxu1 %v1933_v43  ;;  %v697_v8 = vmul.f32 %v2604_v52, %v2361_v60 }
 0x120   : > { %v698_v19 = vmul.f32 %v2604_v52, %v2364_v61  ;;  %v708_v62 = vadd.f32 %v2608_v59, %v689_v29  ;;  %v709_v37 = vadd.f32 %v2608_v59, %v690_v6 }
 0x121   : > { %966 = vmatpush.bf16.msrb.mxu2 %v1921_v13  ;;  %1244 = vmatpush.bf16.msrb.mxu3 %v1925_v7  ;;  %v720_v44 = vpack.c.bf16 %v707_v10, %v706_v38  ;;  %v2768_v22 = vpack.c.bf16 %v715_v49, %v714_v18  ;;  %v716_v63 = vadd.f32 %v2608_v59, %v697_v8 }
 0x122   : > { %v717_v45 = vadd.f32 %v2608_v59, %v698_v19  ;;  %v721_v46 = vpack.c.bf16 %v709_v37, %v708_v62  ;;  %v2861_v59 = vld [vmem:[%s3241_s5 + $0x1] ss:$0 sm:$0xff] }
 0x123   : > { %1415 = vmatpush.bf16.msrb.mxu1 %v1932_v48 }
 0x124   : > { %v2794_v42 = vpack.c.bf16 %v717_v45, %v716_v63 }
 0x125   : > { %1741 = vmatmul.msk.bf16.gmra.mxu0 %vm346_vm0, %v2709_v32  ;;  %1745 = vmatmul.msk.bf16.gmra.mxu2 %vm346_vm0, %v2711_v20 }
 0x126   : > { %1774 = vmatmul.msk.bf16.gmra.mxu1 %vm346_vm0, %v2709_v32  ;;  %1778 = vmatmul.msk.bf16.gmra.mxu3 %vm346_vm0, %v2711_v20 }
 0x127   : > { %967 = vmatpush.bf16.msrb.mxu2 %v1920_v50  ;;  %1245 = vmatpush.bf16.msrb.mxu3 %v1924_v47 }
 0x135   : > { %1742 = vmatmul.msk.bf16.gmra.mxu0 %vm346_vm0, %v720_v44  ;;  %1746 = vmatmul.msk.bf16.gmra.mxu2 %vm346_vm0, %v2768_v22 }
 0x136   : > { %1775 = vmatmul.msk.bf16.gmra.mxu1 %vm346_vm0, %v720_v44  ;;  %1779 = vmatmul.msk.bf16.gmra.mxu3 %vm346_vm0, %v2768_v22 }
 0x145   : > { %1743 = vmatmul.msk.bf16.gmra.mxu0 %vm346_vm0, %v721_v46  ;;  %1747 = vmatmul.msk.bf16.gmra.mxu2 %vm346_vm0, %v2794_v42 }
 0x146   : > { %1776 = vmatmul.msk.bf16.gmra.mxu1 %vm346_vm0, %v721_v46  ;;  %1780 = vmatmul.msk.bf16.gmra.mxu3 %vm346_vm0, %v2794_v42 }
 0x155   : > { %1806 = vmatmul.msk.bf16.vlgmr.msrb.gmra.mxu2 %vm346_vm0, %v2620_v0  ;;  %1863 = vmatmul.msk.bf16.vlgmr.msrb.gmra.mxu0 %vm346_vm0, %v2668_v4 }
 0x156   : > { %1830 = vmatmul.msk.bf16.vlgmr.msrb.gmra.mxu3 %vm346_vm0, %v2668_v4  ;;  %1896 = vmatmul.msk.bf16.vlgmr.msrb.gmra.mxu1 %vm346_vm0, %v2668_v4 }
 0x165   : > { %1807 = vmatmul.msk.bf16.gmra.mxu2 %vm346_vm0, %v2709_v32  ;;  %1864 = vmatmul.msk.bf16.gmra.mxu0 %vm346_vm0, %v2677_v57 }
 0x166   : > { %1831 = vmatmul.msk.bf16.gmra.mxu3 %vm346_vm0, %v2677_v57  ;;  %1897 = vmatmul.msk.bf16.gmra.mxu1 %vm346_vm0, %v2677_v57 }
 0x175   : > { %1808 = vmatmul.msk.bf16.gmra.mxu2 %vm346_vm0, %v720_v44  ;;  %1865 = vmatmul.msk.bf16.gmra.mxu0 %vm346_vm0, %v2685_v55 }
 0x176   : > { %1832 = vmatmul.msk.bf16.gmra.mxu3 %vm346_vm0, %v2685_v55  ;;  %1898 = vmatmul.msk.bf16.gmra.mxu1 %vm346_vm0, %v2685_v55 }
 0x185   : > { %1809 = vmatmul.msk.bf16.gmra.mxu2 %vm346_vm0, %v721_v46  ;;  %1866 = vmatmul.msk.bf16.gmra.mxu0 %vm346_vm0, %v2694_v36 }
 0x186   : > { %1833 = vmatmul.msk.bf16.gmra.mxu3 %vm346_vm0, %v2694_v36  ;;  %1899 = vmatmul.msk.bf16.gmra.mxu1 %vm346_vm0, %v2694_v36 }
 0x192   : > { %v795_v25 = vpop.f32.mrf.mxu0 }
 0x193   : > { %v796_v60 = vadd.f32 %v2835_v15, %v795_v25  ;;  %v2839_v61 = vpop.f32.mrf.mxu1 }
 0x195   : > { %v1009_v52 = vpack.c.bf16 %v796_v60, %v796_v60  ;;  %1810 = vmatmul.msk.bf16.gmra.mxu2 %vm346_vm0, %v2622_v26  ;;  %1867 = vmatmul.msk.bf16.gmra.mxu0 %vm346_vm0, %v2699_v16 }
 0x196   : > { %1834 = vmatmul.msk.bf16.gmra.mxu3 %vm346_vm0, %v2699_v16  ;;  %1900 = vmatmul.msk.bf16.gmra.mxu1 %vm346_vm0, %v2699_v16 }
 0x197   : > { %1026 = vst.msk [vmem:[%s2846_s13] sm:$0xf] %vm1025_vm13, %v1009_v52 }
 0x198   : > { %v815_v0 = vpop.f32.mrf.mxu2 }
 0x199   : > { %v816_v26 = vadd.f32 %v2835_v15, %v815_v0  ;;  %v902_v4 = vpop.f32.mrf.mxu3 }
 0x19a   : > { %v2865_v57 = vadd.f32 %v2861_v59, %v902_v4  ;;  %v797_v55 = vpop.f32.mrf.mxu0  ;;  %v2967_v4 = vld [vmem:[%s3241_s5 + $0x1] ss:$0 sm:$0xff] }
 0x19b   : > { %v1017_v34 = vpack.c.bf16 %v816_v26, %v816_v26  ;;  %v798_v56 = vadd.f32 %v2835_v15, %v797_v55  ;;  %v2868_v5 = vpop.f32.mrf.mxu1 }
 0x19d   : > { %1034 = vst.msk [vmem:[%s2846_s13 + $0x20] sm:$0xf] %vm1025_vm13, %v1017_v34  ;;  %v1010_v51 = vpack.c.bf16 %v798_v56, %v798_v56  ;;  %v2972_v34 = vld [vmem:[%s3241_s5 + $0x2] ss:$0 sm:$0xff] }
 0x19f   : > { %1027 = vst.msk [vmem:[%s2846_s13 + $0x4] sm:$0xf] %vm1025_vm13, %v1010_v51 }
 0x1a0   : > { %v817_v27 = vpop.f32.mrf.mxu2 }
 0x1a1   : > { %v818_v9 = vadd.f32 %v2835_v15, %v817_v27  ;;  %v904_v36 = vpop.f32.mrf.mxu3 }
 0x1a2   : > { %v2876_v54 = vadd.f32 %v2861_v59, %v904_v36  ;;  %v800_v21 = vpop.f32.mrf.mxu0  ;;  %v883_v36 = vadd.f32 %v2861_v59, %v2839_v61  ;;  %v2994_v61 = vld [vmem:[%s3241_s5 + $0x2] ss:$0 sm:$0xff] }
 0x1a3   : > { %v1018_v23 = vpack.c.bf16 %v818_v9, %v818_v9  ;;  %v801_v16 = vadd.f32 %v2835_v15, %v800_v21  ;;  %v2879_v11 = vpop.f32.mrf.mxu1 }
 0x1a5   : > { %1035 = vst.msk [vmem:[%s2846_s13 + $0x24] sm:$0xf] %vm1025_vm13, %v1018_v23  ;;  %v1011_v53 = vpack.c.bf16 %v801_v16, %v801_v16  ;;  %1811 = vmatmul.msk.bf16.gmra.mxu2 %vm346_vm0, %v2711_v20  ;;  %1868 = vmatmul.msk.bf16.gmra.mxu0 %vm346_vm0, %v2703_v58 }
 0x1a6   : > { %1835 = vmatmul.msk.bf16.gmra.mxu3 %vm346_vm0, %v2703_v58  ;;  %1901 = vmatmul.msk.bf16.gmra.mxu1 %vm346_vm0, %v2703_v58 }
 0x1a7   : > { %1028 = vst.msk [vmem:[%s2846_s13 + $0x8] sm:$0xf] %vm1025_vm13, %v1011_v53 }
 0x1a8   : > { %v820_v28 = vpop.f32.mrf.mxu2 }
 0x1a9   : > { %v821_v1 = vadd.f32 %v2835_v15, %v820_v28  ;;  %v907_v32 = vpop.f32.mrf.mxu3 }
 0x1aa   : > { %v2895_v12 = vadd.f32 %v2861_v59, %v907_v32  ;;  %v802_v20 = vpop.f32.mrf.mxu0 }
 0x1ab   : > { %v1019_v24 = vpack.c.bf16 %v821_v1, %v821_v1  ;;  %v803_v30 = vadd.f32 %v2835_v15, %v802_v20  ;;  %v2898_v3 = vpop.f32.mrf.mxu1  ;;  %v2999_v1 = vld [vmem:[%s3241_s5] ss:$0 sm:$0xff] }
 0x1ad   : > { %1036 = vst.msk [vmem:[%s2846_s13 + $0x28] sm:$0xf] %vm1025_vm13, %v1019_v24  ;;  %v1012_v35 = vpack.c.bf16 %v803_v30, %v803_v30 }
 0x1af   : > { %1029 = vst.msk [vmem:[%s2846_s13 + $0xc] sm:$0xf] %vm1025_vm13, %v1012_v35 }
 0x1b0   : > { %v822_v58 = vpop.f32.mrf.mxu2 }
 0x1b1   : > { %v823_v40 = vadd.f32 %v2835_v15, %v822_v58  ;;  %v909_v33 = vpop.f32.mrf.mxu3  ;;  %v885_v58 = vadd.f32 %v2861_v59, %v2868_v5 }
 0x1b2   : > { %v2906_v39 = vadd.f32 %v2861_v59, %v909_v33  ;;  %v805_v13 = vpop.f32.mrf.mxu0 }
 0x1b3   : > { %v1020_v14 = vpack.c.bf16 %v823_v40, %v823_v40  ;;  %v806_v41 = vadd.f32 %v2835_v15, %v805_v13  ;;  %v2909_v17 = vpop.f32.mrf.mxu1 }
 0x1b5   : > { %1037 = vst.msk [vmem:[%s2846_s13 + $0x2c] sm:$0xf] %vm1025_vm13, %v1020_v14  ;;  %v1013_v7 = vpack.c.bf16 %v806_v41, %v806_v41  ;;  %1812 = vmatmul.msk.bf16.gmra.mxu2 %vm346_vm0, %v2768_v22  ;;  %1869 = vmatmul.msk.bf16.gmra.mxu0 %vm346_vm0, %v2707_v31 }
 0x1b6   : > { %1836 = vmatmul.msk.bf16.gmra.mxu3 %vm346_vm0, %v2707_v31  ;;  %1902 = vmatmul.msk.bf16.gmra.mxu1 %vm346_vm0, %v2707_v31 }
 0x1b7   : > { %1030 = vst.msk [vmem:[%s2846_s13 + $0x10] sm:$0xf] %vm1025_vm13, %v1013_v7 }
 0x1b8   : > { %v825_v43 = vpop.f32.mrf.mxu2 }
 0x1b9   : > { %v826_v38 = vadd.f32 %v2835_v15, %v825_v43  ;;  %v912_v10 = vpop.f32.mrf.mxu3 }
 0x1ba   : > { %v2925_v18 = vadd.f32 %v2861_v59, %v912_v10  ;;  %v807_v49 = vpop.f32.mrf.mxu0 }
 0x1bb   : > { %v1021_v50 = vpack.c.bf16 %v826_v38, %v826_v38  ;;  %v808_v44 = vadd.f32 %v2835_v15, %v807_v49  ;;  %v2928_v22 = vpop.f32.mrf.mxu1 }
 0x1bd   : > { %1038 = vst.msk [vmem:[%s2846_s13 + $0x30] sm:$0xf] %vm1025_vm13, %v1021_v50  ;;  %v1014_v47 = vpack.c.bf16 %v808_v44, %v808_v44  ;;  %v888_v44 = vadd.f32 %v2861_v59, %v2879_v11 }
 0x1bf   : > { %1031 = vst.msk [vmem:[%s2846_s13 + $0x14] sm:$0xf] %vm1025_vm13, %v1014_v47 }
 0x1c0   : > { %v827_v31 = vpop.f32.mrf.mxu2 }
 0x1c1   : > { %v828_v48 = vadd.f32 %v2835_v15, %v827_v31  ;;  %v914_v29 = vpop.f32.mrf.mxu3 }
 0x1c2   : > { %v2936_v6 = vadd.f32 %v2861_v59, %v914_v29  ;;  %v810_v8 = vpop.f32.mrf.mxu0 }
 0x1c3   : > { %v1022_v19 = vpack.c.bf16 %v828_v48, %v828_v48  ;;  %v811_v62 = vadd.f32 %v2835_v15, %v810_v8  ;;  %v2939_v37 = vpop.f32.mrf.mxu1 }
 0x1c5   : > { %1039 = vst.msk [vmem:[%s2846_s13 + $0x34] sm:$0xf] %vm1025_vm13, %v1022_v19  ;;  %v1015_v63 = vpack.c.bf16 %v811_v62, %v811_v62  ;;  %1813 = vmatmul.msk.bf16.gmra.mxu2 %vm346_vm0, %v2794_v42  ;;  %1870 = vmatmul.msk.bf16.gmra.mxu0 %vm346_vm0, %v2713_v2 }
 0x1c6   : > { %1837 = vmatmul.msk.bf16.gmra.mxu3 %vm346_vm0, %v2713_v2  ;;  %1903 = vmatmul.msk.bf16.gmra.mxu1 %vm346_vm0, %v2713_v2 }
 0x1c7   : > { %1032 = vst.msk [vmem:[%s2846_s13 + $0x18] sm:$0xf] %vm1025_vm13, %v1015_v63 }
 0x1c8   : > { %v830_v45 = vpop.f32.mrf.mxu2 }
 0x1c9   : > { %v831_v46 = vadd.f32 %v2835_v15, %v830_v45  ;;  %v917_v25 = vpop.f32.mrf.mxu3 }
 0x1ca   : > { %v2955_v60 = vadd.f32 %v2861_v59, %v917_v25  ;;  %v812_v52 = vpop.f32.mrf.mxu0 }
 0x1cb   : > { %v1023_v42 = vpack.c.bf16 %v831_v46, %v831_v46  ;;  %v813_v0 = vadd.f32 %v2835_v15, %v812_v52  ;;  %v2958_v26 = vpop.f32.mrf.mxu1  ;;  %v890_v52 = vadd.f32 %v2861_v59, %v2898_v3 }
 0x1cd   : > { %1040 = vst.msk [vmem:[%s2846_s13 + $0x38] sm:$0xf] %vm1025_vm13, %v1023_v42  ;;  %v1016_v2 = vpack.c.bf16 %v813_v0, %v813_v0 }
 0x1cf   : > { %1033 = vst.msk [vmem:[%s2846_s13 + $0x1c] sm:$0xf] %vm1025_vm13, %v1016_v2 }
 0x1d0   : > { %v832_v55 = vpop.f32.mrf.mxu2 }
 0x1d1   : > { %v833_v56 = vadd.f32 %v2835_v15, %v832_v55  ;;  %v919_v51 = vpop.f32.mrf.mxu3 }
 0x1d2   : > { %v2976_v27 = vadd.f32 %v2861_v59, %v919_v51  ;;  %v1332_v9 = vpop.f32.mrf.mxu0 }
 0x1d3   : > { %v1024_v21 = vpack.c.bf16 %v833_v56, %v833_v56  ;;  %v1333_v23 = vadd.f32 %v2967_v4, %v1332_v9  ;;  %v1417_v16 = vpop.f32.mrf.mxu1 }
 0x1d4   : > { %v1418_v53 = vadd.f32 %v2972_v34, %v1417_v16 }
 0x1d5   : > { %1041 = vst.msk [vmem:[%s2846_s13 + $0x3c] sm:$0xf] %vm1025_vm13, %v1024_v21  ;;  %v1986_v15 = vpack.i.bf16 %v1333_v23, %v883_v36 }
 0x1d6   : > { %v1537_v28 = vpack.c.bf16 %v1418_v53, %v1418_v53  ;;  %v893_v53 = vadd.f32 %v2861_v59, %v2909_v17 }
 0x1d7   : > { %1987 = vxpose.xlu2.b32.start [1/16] (narrow) %v1986_v15, 64 }
 0x1d8   : > { %1553 = vst.msk [vmem:[%s2989_s10 + $0x40] sm:$0xf] %vm1025_vm13, %v1537_v28  ;;  %v969_v32 = vpop.f32.mrf.mxu2 }
 0x1d9   : > { %v970_v20 = vadd.f32 %v2994_v61, %v969_v32  ;;  %v1247_v24 = vpop.f32.mrf.mxu3 }
 0x1da   : > { %v1248_v30 = vadd.f32 %v2999_v1, %v1247_v24  ;;  %v1334_v35 = vpop.f32.mrf.mxu0 }
 0x1db   : > { %v1090_v40 = vpack.c.bf16 %v970_v20, %v970_v20  ;;  %v1335_v33 = vadd.f32 %v2967_v4, %v1334_v35  ;;  %v1419_v13 = vpop.f32.mrf.mxu1 }
 0x1dc   : > { %v1457_v14 = vpack.c.bf16 %v1248_v30, %v1248_v30  ;;  %v1420_v41 = vadd.f32 %v2972_v34, %v1419_v13 }
 0x1dd   : > { %1106 = vst.msk [vmem:[%s2989_s10] sm:$0xf] %vm1025_vm13, %v1090_v40  ;;  %v1988_v7 = vpack.i.bf16 %v1335_v33, %v885_v58 }
 0x1de   : > { %1473 = vst.msk [vmem:[%s2846_s13 + $0x40] sm:$0xf] %vm1025_vm13, %v1457_v14  ;;  %v1538_v43 = vpack.c.bf16 %v1420_v41, %v1420_v41  ;;  %v895_v14 = vadd.f32 %v2861_v59, %v2928_v22 }
 0x1df   : > { %1989 = vxpose.xlu2.b32.cont [2/16] (narrow) %v1988_v7, 64 }
 0x1e0   : > { %1554 = vst.msk [vmem:[%s2989_s10 + $0x44] sm:$0xf] %vm1025_vm13, %v1538_v43  ;;  %v971_v38 = vpop.f32.mrf.mxu2 }
 0x1e1   : > { %v972_v5 = vadd.f32 %v2994_v61, %v971_v38  ;;  %v1249_v10 = vpop.f32.mrf.mxu3 }
 0x1e2   : > { %v1250_v49 = vadd.f32 %v2999_v1, %v1249_v10  ;;  %v1337_v50 = vpop.f32.mrf.mxu0 }
 0x1e3   : > { %v1091_v47 = vpack.c.bf16 %v972_v5, %v972_v5  ;;  %v1338_v31 = vadd.f32 %v2967_v4, %v1337_v50  ;;  %v1422_v48 = vpop.f32.mrf.mxu1 }
 0x1e4   : > { %v1458_v29 = vpack.c.bf16 %v1250_v49, %v1250_v49  ;;  %v1423_v8 = vadd.f32 %v2972_v34, %v1422_v48  ;;  %v898_v48 = vadd.f32 %v2861_v59, %v2939_v37 }
 0x1e5   : > { %1107 = vst.msk [vmem:[%s2989_s10 + $0x4] sm:$0xf] %vm1025_vm13, %v1091_v47  ;;  %v1990_v19 = vpack.i.bf16 %v1338_v31, %v888_v44 }
 0x1e6   : > { %1474 = vst.msk [vmem:[%s2846_s13 + $0x44] sm:$0xf] %vm1025_vm13, %v1458_v29  ;;  %v1539_v62 = vpack.c.bf16 %v1423_v8, %v1423_v8 }
 0x1e7   : > { %1991 = vxpose.xlu2.b32.cont [3/16] (narrow) %v1990_v19, 64 }
 0x1e8   : > { %1555 = vst.msk [vmem:[%s2989_s10 + $0x48] sm:$0xf] %vm1025_vm13, %v1539_v62  ;;  %v974_v63 = vpop.f32.mrf.mxu2 }
 0x1e9   : > { %v975_v11 = vadd.f32 %v2994_v61, %v974_v63  ;;  %v1252_v45 = vpop.f32.mrf.mxu3 }
 0x1ea   : > { %v1253_v46 = vadd.f32 %v2999_v1, %v1252_v45  ;;  %v1339_v25 = vpop.f32.mrf.mxu0 }
 0x1eb   : > { %v1092_v42 = vpack.c.bf16 %v975_v11, %v975_v11  ;;  %v1340_v0 = vadd.f32 %v2967_v4, %v1339_v25  ;;  %v1424_v2 = vpop.f32.mrf.mxu1 }
 0x1ec   : > { %v1459_v55 = vpack.c.bf16 %v1253_v46, %v1253_v46  ;;  %v1425_v56 = vadd.f32 %v2972_v34, %v1424_v2 }
 0x1ed   : > { %1108 = vst.msk [vmem:[%s2989_s10 + $0x8] sm:$0xf] %vm1025_vm13, %v1092_v42  ;;  %v1992_v51 = vpack.i.bf16 %v1340_v0, %v890_v52  ;;  %v900_v0 = vadd.f32 %v2861_v59, %v2958_v26 }
 0x1ee   : > { %1475 = vst.msk [vmem:[%s2846_s13 + $0x48] sm:$0xf] %vm1025_vm13, %v1459_v55  ;;  %v1540_v9 = vpack.c.bf16 %v1425_v56, %v1425_v56 }
 0x1ef   : > { %1993 = vxpose.xlu2.b32.cont [4/16] (narrow) %v1992_v51, 64 }
 0x1f0   : > { %1556 = vst.msk [vmem:[%s2989_s10 + $0x4c] sm:$0xf] %vm1025_vm13, %v1540_v9  ;;  %v976_v36 = vpop.f32.mrf.mxu2 }
 0x1f1   : > { %v977_v3 = vadd.f32 %v2994_v61, %v976_v36  ;;  %v1254_v21 = vpop.f32.mrf.mxu3 }
 0x1f2   : > { %v1255_v23 = vadd.f32 %v2999_v1, %v1254_v21  ;;  %v1342_v16 = vpop.f32.mrf.mxu0 }
 0x1f3   : > { %v1093_v15 = vpack.c.bf16 %v977_v3, %v977_v3  ;;  %v1343_v28 = vadd.f32 %v2967_v4, %v1342_v16  ;;  %v1427_v32 = vpop.f32.mrf.mxu1 }
 0x1f4   : > { %v1460_v20 = vpack.c.bf16 %v1255_v23, %v1255_v23  ;;  %v1428_v24 = vadd.f32 %v2972_v34, %v1427_v32 }
 0x1f5   : > { %1109 = vst.msk [vmem:[%s2989_s10 + $0xc] sm:$0xf] %vm1025_vm13, %v1093_v15  ;;  %v1994_v30 = vpack.i.bf16 %v1343_v28, %v893_v53 }
 0x1f6   : > { %1476 = vst.msk [vmem:[%s2846_s13 + $0x4c] sm:$0xf] %vm1025_vm13, %v1460_v20  ;;  %v1541_v35 = vpack.c.bf16 %v1428_v24, %v1428_v24 }
 0x1f7   : > { %1995 = vxpose.xlu2.b32.cont [5/16] (narrow) %v1994_v30, 64 }
 0x1f8   : > { %1557 = vst.msk [vmem:[%s2989_s10 + $0x50] sm:$0xf] %vm1025_vm13, %v1541_v35  ;;  %v979_v58 = vpop.f32.mrf.mxu2 }
 0x1f9   : > { %v980_v17 = vadd.f32 %v2994_v61, %v979_v58  ;;  %v1257_v40 = vpop.f32.mrf.mxu3 }
 0x1fa   : > { %v1258_v33 = vadd.f32 %v2999_v1, %v1257_v40  ;;  %v1344_v13 = vpop.f32.mrf.mxu0 }
 0x1fb   : > { %v1094_v41 = vpack.c.bf16 %v980_v17, %v980_v17  ;;  %v1345_v7 = vadd.f32 %v2967_v4, %v1344_v13  ;;  %v1429_v43 = vpop.f32.mrf.mxu1 }
 0x1fc   : > { %v1461_v38 = vpack.c.bf16 %v1258_v33, %v1258_v33  ;;  %v1430_v5 = vadd.f32 %v2972_v34, %v1429_v43 }
 0x1fd   : > { %1110 = vst.msk [vmem:[%s2989_s10 + $0x10] sm:$0xf] %vm1025_vm13, %v1094_v41  ;;  %v1996_v10 = vpack.i.bf16 %v1345_v7, %v895_v14 }
 0x1fe   : > { %1477 = vst.msk [vmem:[%s2846_s13 + $0x50] sm:$0xf] %vm1025_vm13, %v1461_v38  ;;  %v1542_v49 = vpack.c.bf16 %v1430_v5, %v1430_v5 }
 0x1ff   : > { %1997 = vxpose.xlu2.b32.cont [6/16] (narrow) %v1996_v10, 64 }
 0x200   : > { %1558 = vst.msk [vmem:[%s2989_s10 + $0x54] sm:$0xf] %vm1025_vm13, %v1542_v49  ;;  %v981_v50 = vpop.f32.mrf.mxu2 }
 0x201   : > { %v982_v22 = vadd.f32 %v2994_v61, %v981_v50  ;;  %v1259_v44 = vpop.f32.mrf.mxu3 }
 0x202   : > { %v1260_v47 = vadd.f32 %v2999_v1, %v1259_v44  ;;  %v1347_v31 = vpop.f32.mrf.mxu0 }
 0x203   : > { %v1095_v29 = vpack.c.bf16 %v982_v22, %v982_v22  ;;  %v1348_v8 = vadd.f32 %v2967_v4, %v1347_v31  ;;  %v1432_v19 = vpop.f32.mrf.mxu1 }
 0x204   : > { %v1462_v62 = vpack.c.bf16 %v1260_v47, %v1260_v47  ;;  %v1433_v63 = vadd.f32 %v2972_v34, %v1432_v19 }
 0x205   : > { %1111 = vst.msk [vmem:[%s2989_s10 + $0x14] sm:$0xf] %vm1025_vm13, %v1095_v29  ;;  %v1998_v11 = vpack.i.bf16 %v1348_v8, %v898_v48 }
 0x206   : > { %1478 = vst.msk [vmem:[%s2846_s13 + $0x54] sm:$0xf] %vm1025_vm13, %v1462_v62  ;;  %v1543_v45 = vpack.c.bf16 %v1433_v63, %v1433_v63 }
 0x207   : > { %1999 = vxpose.xlu2.b32.cont [7/16] (narrow) %v1998_v11, 64 }
 0x208   : > { %1559 = vst.msk [vmem:[%s2989_s10 + $0x58] sm:$0xf] %vm1025_vm13, %v1543_v45  ;;  %v984_v46 = vpop.f32.mrf.mxu2 }
 0x209   : > { %v985_v37 = vadd.f32 %v2994_v61, %v984_v46  ;;  %v1262_v25 = vpop.f32.mrf.mxu3 }
 0x20a   : > { %v1263_v52 = vadd.f32 %v2999_v1, %v1262_v25  ;;  %v1349_v42 = vpop.f32.mrf.mxu0 }
 0x20b   : > { %v1096_v2 = vpack.c.bf16 %v985_v37, %v985_v37  ;;  %v1350_v55 = vadd.f32 %v2967_v4, %v1349_v42  ;;  %v1434_v56 = vpop.f32.mrf.mxu1 }
 0x20c   : > { %v1463_v51 = vpack.c.bf16 %v1263_v52, %v1263_v52  ;;  %v1435_v9 = vadd.f32 %v2972_v34, %v1434_v56 }
 0x20d   : > { %1112 = vst.msk [vmem:[%s2989_s10 + $0x18] sm:$0xf] %vm1025_vm13, %v1096_v2  ;;  %v2000_v36 = vpack.i.bf16 %v1350_v55, %v900_v0 }
 0x20e   : > { %1479 = vst.msk [vmem:[%s2846_s13 + $0x58] sm:$0xf] %vm1025_vm13, %v1463_v51  ;;  %v1544_v3 = vpack.c.bf16 %v1435_v9, %v1435_v9 }
 0x20f   : > { %2001 = vxpose.xlu2.b32.cont [8/16] (narrow) %v2000_v36, 64 }
 0x210   : > { %1560 = vst.msk [vmem:[%s2989_s10 + $0x5c] sm:$0xf] %vm1025_vm13, %v1544_v3  ;;  %v986_v59 = vpop.f32.mrf.mxu2 }
 0x211   : > { %v987_v26 = vadd.f32 %v2994_v61, %v986_v59  ;;  %v1264_v21 = vpop.f32.mrf.mxu3 }
 0x212   : > { %v1265_v23 = vadd.f32 %v2999_v1, %v1264_v21  ;;  %v1352_v16 = vpop.f32.mrf.mxu0 }
 0x213   : > { %v1097_v53 = vpack.c.bf16 %v987_v26, %v987_v26  ;;  %v1353_v15 = vadd.f32 %v2967_v4, %v1352_v16  ;;  %v1437_v28 = vpop.f32.mrf.mxu1 }
 0x214   : > { %v1464_v32 = vpack.c.bf16 %v1265_v23, %v1265_v23  ;;  %v1438_v20 = vadd.f32 %v2972_v34, %v1437_v28 }
 0x215   : > { %1113 = vst.msk [vmem:[%s2989_s10 + $0x1c] sm:$0xf] %vm1025_vm13, %v1097_v53  ;;  %v2002_v24 = vpack.i.bf16 %v1353_v15, %v2865_v57 }
 0x216   : > { %1480 = vst.msk [vmem:[%s2846_s13 + $0x5c] sm:$0xf] %vm1025_vm13, %v1464_v32  ;;  %v1545_v30 = vpack.c.bf16 %v1438_v20, %v1438_v20 }
 0x217   : > { %2003 = vxpose.xlu2.b32.cont [9/16] (narrow) %v2002_v24, 64 }
 0x218   : > { %1561 = vst.msk [vmem:[%s2989_s10 + $0x60] sm:$0xf] %vm1025_vm13, %v1545_v30  ;;  %v989_v35 = vpop.f32.mrf.mxu2 }
 0x219   : > { %v990_v58 = vadd.f32 %v2994_v61, %v989_v35  ;;  %v1267_v17 = vpop.f32.mrf.mxu3 }
 0x21a   : > { %v1268_v40 = vadd.f32 %v2999_v1, %v1267_v17  ;;  %v1354_v33 = vpop.f32.mrf.mxu0 }
 0x21b   : > { %v1098_v13 = vpack.c.bf16 %v990_v58, %v990_v58  ;;  %v1355_v14 = vadd.f32 %v2967_v4, %v1354_v33  ;;  %v1439_v41 = vpop.f32.mrf.mxu1 }
 0x21c   : > { %v1465_v57 = vpack.c.bf16 %v1268_v40, %v1268_v40  ;;  %v1440_v7 = vadd.f32 %v2972_v34, %v1439_v41 }
 0x21d   : > { %1114 = vst.msk [vmem:[%s2989_s10 + $0x20] sm:$0xf] %vm1025_vm13, %v1098_v13  ;;  %v2004_v43 = vpack.i.bf16 %v1355_v14, %v2876_v54 }
 0x21e   : > { %1481 = vst.msk [vmem:[%s2846_s13 + $0x60] sm:$0xf] %vm1025_vm13, %v1465_v57  ;;  %v1546_v38 = vpack.c.bf16 %v1440_v7, %v1440_v7 }
 0x21f   : > { %2005 = vxpose.xlu2.b32.cont [10/16] (narrow) %v2004_v43, 64 }
 0x220   : > { %1562 = vst.msk [vmem:[%s2989_s10 + $0x64] sm:$0xf] %vm1025_vm13, %v1546_v38  ;;  %v991_v5 = vpop.f32.mrf.mxu2 }
 0x221   : > { %v992_v10 = vadd.f32 %v2994_v61, %v991_v5  ;;  %v1269_v49 = vpop.f32.mrf.mxu3 }
 0x222   : > { %v1270_v50 = vadd.f32 %v2999_v1, %v1269_v49  ;;  %v1357_v22 = vpop.f32.mrf.mxu0 }
 0x223   : > { %v1099_v44 = vpack.c.bf16 %v992_v10, %v992_v10  ;;  %v1358_v47 = vadd.f32 %v2967_v4, %v1357_v22  ;;  %v1442_v31 = vpop.f32.mrf.mxu1 }
 0x224   : > { %v1466_v54 = vpack.c.bf16 %v1270_v50, %v1270_v50  ;;  %v1443_v48 = vadd.f32 %v2972_v34, %v1442_v31 }
 0x225   : > { %1115 = vst.msk [vmem:[%s2989_s10 + $0x24] sm:$0xf] %vm1025_vm13, %v1099_v44  ;;  %v2006_v29 = vpack.i.bf16 %v1358_v47, %v2895_v12 }
 0x226   : > { %1482 = vst.msk [vmem:[%s2846_s13 + $0x64] sm:$0xf] %vm1025_vm13, %v1466_v54  ;;  %v1547_v8 = vpack.c.bf16 %v1443_v48, %v1443_v48 }
 0x227   : > { %2007 = vxpose.xlu2.b32.cont [11/16] (narrow) %v2006_v29, 64 }
 0x228   : > { %1563 = vst.msk [vmem:[%s2989_s10 + $0x68] sm:$0xf] %vm1025_vm13, %v1547_v8  ;;  %v994_v19 = vpop.f32.mrf.mxu2 }
 0x229   : > { %v995_v62 = vadd.f32 %v2994_v61, %v994_v19  ;;  %v1272_v63 = vpop.f32.mrf.mxu3 }
 0x22a   : > { %v1273_v11 = vadd.f32 %v2999_v1, %v1272_v63  ;;  %v1359_v45 = vpop.f32.mrf.mxu0 }
 0x22b   : > { %v1100_v46 = vpack.c.bf16 %v995_v62, %v995_v62  ;;  %v1360_v37 = vadd.f32 %v2967_v4, %v1359_v45  ;;  %v1444_v25 = vpop.f32.mrf.mxu1 }
 0x22c   : > { %v1467_v12 = vpack.c.bf16 %v1273_v11, %v1273_v11  ;;  %v1445_v52 = vadd.f32 %v2972_v34, %v1444_v25 }
 0x22d   : > { %1116 = vst.msk [vmem:[%s2989_s10 + $0x28] sm:$0xf] %vm1025_vm13, %v1100_v46  ;;  %v2008_v42 = vpack.i.bf16 %v1360_v37, %v2906_v39 }
 0x22e   : > { %1483 = vst.msk [vmem:[%s2846_s13 + $0x68] sm:$0xf] %vm1025_vm13, %v1467_v12  ;;  %v1548_v0 = vpack.c.bf16 %v1445_v52, %v1445_v52 }
 0x22f   : > { %2009 = vxpose.xlu2.b32.cont [12/16] (narrow) %v2008_v42, 64 }
 0x230   : > { %1564 = vst.msk [vmem:[%s2989_s10 + $0x6c] sm:$0xf] %vm1025_vm13, %v1548_v0  ;;  %v996_v2 = vpop.f32.mrf.mxu2 }
 0x231   : > { %v997_v55 = vadd.f32 %v2994_v61, %v996_v2  ;;  %v1274_v56 = vpop.f32.mrf.mxu3 }
 0x232   : > { %v1275_v51 = vadd.f32 %v2999_v1, %v1274_v56  ;;  %v1362_v9 = vpop.f32.mrf.mxu0 }
 0x233   : > { %v1101_v36 = vpack.c.bf16 %v997_v55, %v997_v55  ;;  %v1363_v3 = vadd.f32 %v2967_v4, %v1362_v9  ;;  %v1447_v59 = vpop.f32.mrf.mxu1 }
 0x234   : > { %v1468_v39 = vpack.c.bf16 %v1275_v51, %v1275_v51  ;;  %v1448_v26 = vadd.f32 %v2972_v34, %v1447_v59 }
 0x235   : > { %1117 = vst.msk [vmem:[%s2989_s10 + $0x2c] sm:$0xf] %vm1025_vm13, %v1101_v36  ;;  %v2010_v21 = vpack.i.bf16 %v1363_v3, %v2925_v18 }
 0x236   : > { %1484 = vst.msk [vmem:[%s2846_s13 + $0x6c] sm:$0xf] %vm1025_vm13, %v1468_v39  ;;  %v1549_v23 = vpack.c.bf16 %v1448_v26, %v1448_v26 }
 0x237   : > { %2011 = vxpose.xlu2.b32.cont [13/16] (narrow) %v2010_v21, 64 }
 0x238   : > { %1565 = vst.msk [vmem:[%s2989_s10 + $0x70] sm:$0xf] %vm1025_vm13, %v1549_v23  ;;  %v999_v16 = vpop.f32.mrf.mxu2 }
 0x239   : > { %v1000_v53 = vadd.f32 %v2994_v61, %v999_v16  ;;  %v1277_v15 = vpop.f32.mrf.mxu3 }
 0x23a   : > { %v1278_v28 = vadd.f32 %v2999_v1, %v1277_v15  ;;  %v1364_v32 = vpop.f32.mrf.mxu0 }
 0x23b   : > { %v1102_v20 = vpack.c.bf16 %v1000_v53, %v1000_v53  ;;  %v1365_v24 = vadd.f32 %v2967_v4, %v1364_v32  ;;  %v1449_v30 = vpop.f32.mrf.mxu1 }
 0x23c   : > { %v1469_v18 = vpack.c.bf16 %v1278_v28, %v1278_v28  ;;  %v1450_v35 = vadd.f32 %v2972_v34, %v1449_v30 }
 0x23d   : > { %1118 = vst.msk [vmem:[%s2989_s10 + $0x30] sm:$0xf] %vm1025_vm13, %v1102_v20  ;;  %v2012_v58 = vpack.i.bf16 %v1365_v24, %v2936_v6 }
 0x23e   : > { %1485 = vst.msk [vmem:[%s2846_s13 + $0x70] sm:$0xf] %vm1025_vm13, %v1469_v18  ;;  %v1550_v17 = vpack.c.bf16 %v1450_v35, %v1450_v35 }
 0x23f   : > { %2013 = vxpose.xlu2.b32.cont [14/16] (narrow) %v2012_v58, 64 }
 0x240   : > { %1566 = vst.msk [vmem:[%s2989_s10 + $0x74] sm:$0xf] %vm1025_vm13, %v1550_v17  ;;  %v1001_v40 = vpop.f32.mrf.mxu2 }
 0x241   : > { %v1002_v33 = vadd.f32 %v2994_v61, %v1001_v40  ;;  %v1279_v13 = vpop.f32.mrf.mxu3 }
 0x242   : > { %v1280_v14 = vadd.f32 %v2999_v1, %v1279_v13  ;;  %v1367_v41 = vpop.f32.mrf.mxu0 }
 0x243   : > { %v1103_v57 = vpack.c.bf16 %v1002_v33, %v1002_v33  ;;  %v1368_v7 = vadd.f32 %v2967_v4, %v1367_v41  ;;  %v1452_v43 = vpop.f32.mrf.mxu1 }
 0x244   : > { %v1470_v6 = vpack.c.bf16 %v1280_v14, %v1280_v14  ;;  %v1453_v38 = vadd.f32 %v2972_v34, %v1452_v43 }
 0x245   : > { %1119 = vst.msk [vmem:[%s2989_s10 + $0x34] sm:$0xf] %vm1025_vm13, %v1103_v57  ;;  %v2014_v5 = vpack.i.bf16 %v1368_v7, %v2955_v60 }
 0x246   : > { %1486 = vst.msk [vmem:[%s2846_s13 + $0x74] sm:$0xf] %vm1025_vm13, %v1470_v6  ;;  %v1551_v10 = vpack.c.bf16 %v1453_v38, %v1453_v38 }
 0x247   : > { %2015 = vxpose.xlu2.b32.cont [15/16] (narrow) %v2014_v5, 64 }
 0x248   : > { %1567 = vst.msk [vmem:[%s2989_s10 + $0x78] sm:$0xf] %vm1025_vm13, %v1551_v10  ;;  %v1004_v49 = vpop.f32.mrf.mxu2 }
 0x249   : > { %v1005_v50 = vadd.f32 %v2994_v61, %v1004_v49  ;;  %v1282_v22 = vpop.f32.mrf.mxu3 }
 0x24a   : > { %v1283_v44 = vadd.f32 %v2999_v1, %v1282_v22  ;;  %v1369_v47 = vpop.f32.mrf.mxu0 }
 0x24b   : > { %v1104_v31 = vpack.c.bf16 %v1005_v50, %v1005_v50  ;;  %v1370_v54 = vadd.f32 %v2967_v4, %v1369_v47  ;;  %v1454_v60 = vpop.f32.mrf.mxu1 }
 0x24c   : > { %v1471_v48 = vpack.c.bf16 %v1283_v44, %v1283_v44  ;;  %v1455_v29 = vadd.f32 %v2972_v34, %v1454_v60 }
 0x24d   : > { %1120 = vst.msk [vmem:[%s2989_s10 + $0x38] sm:$0xf] %vm1025_vm13, %v1104_v31  ;;  %v2016_v8 = vpack.i.bf16 %v1370_v54, %v2976_v27 }
 0x24e   : > { %1487 = vst.msk [vmem:[%s2846_s13 + $0x78] sm:$0xf] %vm1025_vm13, %v1471_v48  ;;  %v1552_v19 = vpack.c.bf16 %v1455_v29, %v1455_v29 }
 0x24f   : > { %2017 = vxpose.xlu2.b32.end [16/16] (narrow) %v2016_v8, 64 }
 0x250   : > { %1568 = vst.msk [vmem:[%s2989_s10 + $0x7c] sm:$0xf] %vm1025_vm13, %v1552_v19  ;;  %v1006_v62 = vpop.f32.mrf.mxu2 }
 0x251   : > { %v1007_v4 = vadd.f32 %v2994_v61, %v1006_v62  ;;  %v1284_v63 = vpop.f32.mrf.mxu3 }
 0x252   : > { %v1285_v11 = vadd.f32 %v2999_v1, %v1284_v63 }
 0x253   : > { %v1105_v45 = vpack.c.bf16 %v1007_v4, %v1007_v4 }
 0x254   : > { %v1472_v46 = vpack.c.bf16 %v1285_v11, %v1285_v11 }
 0x255   : > { %1121 = vst.msk [vmem:[%s2989_s10 + $0x3c] sm:$0xf] %vm1025_vm13, %v1105_v45 }
 0x256   : > { %1488 = vst.msk [vmem:[%s2846_s13 + $0x7c] sm:$0xf] %vm1025_vm13, %v1472_v46  ;;  %s1936_s13 = sshll.u32 %s2204_s9, 6  ;;  %s1575_s9 = scalar_lea.sflag [#allocation3], %s304_s17 }
 0x257   : > { %s1594_s24 = scalar_lea.hbm %s3243_s7, %s1936_s13 }
 0x258   : > { %s1597_s10 = sshll.u32 %s1594_s24, 4  ;;  %s1598_s10 = int_to_ptr.hbm [resolvable:$true] %s1597_s10 }
 0x259   : > { %s2086_s12 = sshra.s32 %s1598_s10, 4  ;;  %s2087_s12 = int_to_ptr.hbm [resolvable:$true] %s2086_s12 }
 0x25a   : > { %s2088_s18 = scalar_lea.hbm %s2087_s12, 64  ;;  %p2093_p0 = scmp.lt.s32.totalorder %s2087_s12, %s3243_s7 }
 0x25b   : > { %p2089_p11 = scmp.ne.s32.totalorder %s2087_s12, %s2088_s18  ;;  %p2094_p1 = scmp.lt.s32.totalorder %s2092_s26, %s2088_s18 }
 0x25d   : > { %p2090_p12 = pnand %p2089_p11, %p2221_p5  ;;  %p2095_p2 = por %p2094_p1, %p2093_p0 }
 0x25f   : > { %p2091_p13 = pneg %p2090_p12 }
 0x261   : > { %p2096_p3 = pnand %p2095_p2, %p2091_p13 }
 0x270   : > { %v2018_v34 = vpop.trf.xlu2 }
 0x271   : > { %v2022_v27 = vunpack.i.h.bf16 %v2018_v34  ;;  %v2019_v37 = vunpack.i.l.bf16 %v2018_v34 }
 0x273   : > { %v1521_v25 = vpack.c.bf16 %v2022_v27, %v2022_v27  ;;  %v1074_v12 = vpack.c.bf16 %v2019_v37, %v2019_v37 }
 0x275   : > { %1082 = vst [vmem:[%s3184_s22] sm:$0xf] %v1074_v12 }
 0x276   : > { %1529 = vst [vmem:[%s3184_s22 + $0x4] sm:$0xf] %v1521_v25 }
 0x278   : > { %v2023_v61 = vpop.trf.xlu2 }
 0x279   : > { %v2027_v1 = vunpack.i.h.bf16 %v2023_v61  ;;  %v2024_v52 = vunpack.i.l.bf16 %v2023_v61 }
 0x27b   : > { %v1522_v42 = vpack.c.bf16 %v2027_v1, %v2027_v1  ;;  %v1075_v0 = vpack.c.bf16 %v2024_v52, %v2024_v52 }
 0x27d   : > { %1083 = vst [vmem:[%s3184_s22 + $0x8] sm:$0xf] %v1075_v0 }
 0x27e   : > { %1530 = vst [vmem:[%s3184_s22 + $0xc] sm:$0xf] %v1522_v42 }
 0x280   : > { %v2028_v2 = vpop.trf.xlu2 }
 0x281   : > { %v2032_v55 = vunpack.i.h.bf16 %v2028_v2  ;;  %v2029_v56 = vunpack.i.l.bf16 %v2028_v2 }
 0x283   : > { %v1523_v51 = vpack.c.bf16 %v2032_v55, %v2032_v55  ;;  %v1076_v9 = vpack.c.bf16 %v2029_v56, %v2029_v56 }
 0x285   : > { %1084 = vst [vmem:[%s3184_s22 + $0x10] sm:$0xf] %v1076_v9 }
 0x286   : > { %1531 = vst [vmem:[%s3184_s22 + $0x14] sm:$0xf] %v1523_v51 }
 0x288   : > { %v2033_v36 = vpop.trf.xlu2 }
 0x289   : > { %v2037_v3 = vunpack.i.h.bf16 %v2033_v36  ;;  %v2034_v59 = vunpack.i.l.bf16 %v2033_v36 }
 0x28b   : > { %v1524_v39 = vpack.c.bf16 %v2037_v3, %v2037_v3  ;;  %v1077_v26 = vpack.c.bf16 %v2034_v59, %v2034_v59 }
 0x28d   : > { %1085 = vst [vmem:[%s3184_s22 + $0x18] sm:$0xf] %v1077_v26 }
 0x28e   : > { %1532 = vst [vmem:[%s3184_s22 + $0x1c] sm:$0xf] %v1524_v39 }
 0x290   : > { %v2038_v21 = vpop.trf.xlu2 }
 0x291   : > { %v2042_v23 = vunpack.i.h.bf16 %v2038_v21  ;;  %v2039_v16 = vunpack.i.l.bf16 %v2038_v21 }
 0x293   : > { %v1525_v53 = vpack.c.bf16 %v2042_v23, %v2042_v23  ;;  %v1078_v15 = vpack.c.bf16 %v2039_v16, %v2039_v16 }
 0x295   : > { %1086 = vst [vmem:[%s3184_s22 + $0x20] sm:$0xf] %v1078_v15 }
 0x296   : > { %1533 = vst [vmem:[%s3184_s22 + $0x24] sm:$0xf] %v1525_v53 }
 0x298   : > { %v2043_v28 = vpop.trf.xlu2 }
 0x299   : > { %v2047_v32 = vunpack.i.h.bf16 %v2043_v28  ;;  %v2044_v20 = vunpack.i.l.bf16 %v2043_v28 }
 0x29b   : > { %v1526_v24 = vpack.c.bf16 %v2047_v32, %v2047_v32  ;;  %v1079_v30 = vpack.c.bf16 %v2044_v20, %v2044_v20 }
 0x29d   : > { %1087 = vst [vmem:[%s3184_s22 + $0x28] sm:$0xf] %v1079_v30 }
 0x29e   : > { %1534 = vst [vmem:[%s3184_s22 + $0x2c] sm:$0xf] %v1526_v24 }
 0x2a0   : > { %v2048_v18 = vpop.trf.xlu2 }
 0x2a1   : > { %v2052_v35 = vunpack.i.h.bf16 %v2048_v18  ;;  %v2049_v58 = vunpack.i.l.bf16 %v2048_v18 }
 0x2a3   : > { %v1527_v17 = vpack.c.bf16 %v2052_v35, %v2052_v35  ;;  %v1080_v40 = vpack.c.bf16 %v2049_v58, %v2049_v58 }
 0x2a5   : > { %1088 = vst [vmem:[%s3184_s22 + $0x30] sm:$0xf] %v1080_v40 }
 0x2a6   : > { %1535 = vst [vmem:[%s3184_s22 + $0x34] sm:$0xf] %v1527_v17 }
 0x2a8   : > { %v2053_v33 = vpop.trf.xlu2 }
 0x2a9   : > { %v2057_v13 = vunpack.i.h.bf16 %v2053_v33  ;;  %v2054_v14 = vunpack.i.l.bf16 %v2053_v33 }
 0x2ab   : > { %v1528_v41 = vpack.c.bf16 %v2057_v13, %v2057_v13  ;;  %v1081_v57 = vpack.c.bf16 %v2054_v14, %v2054_v14 }
 0x2ad   : > { %1089 = vst [vmem:[%s3184_s22 + $0x38] sm:$0xf] %v1081_v57 }
 0x2ae   : > { %1536 = vst [vmem:[%s3184_s22 + $0x3c] sm:$0xf] %v1528_v41 }
 0x2af   : > { %2099 = shalt.err (!%p2096_p3)
}
 0x2b0   : > { %s2136_s17 = smov 128   ;;  %s2137_s22 = smov 8  }
 0x2b1   : > { %1945 = dma.vmem_to_hbm [thread:$0]  (%p2221_p5), %s1596_s25, 1024, %s1598_s10, %s1575_s9, %s2136_s17, %s2136_s17, %s2137_s22  }
 0x2b2 PF: > { %p1951_p4 = scmp.ge.s32.totalorder %s2134_s30, 2  ;;  %s1623_s23 = sand.u32 1, %s2122_s27  }
 0x2b3   : > { %s1624_s24 = scalar_lea.sflag [#allocation3], %s1623_s23 }
 0x2b4   : > { %p1948_p7 = pnand %p1951_p4, %p2225_p6 }
 0x2b6   : > { %p1949_p8 = pneg %p1948_p7 }
 0x2b8   : > { %2117 = dma.done.wait (%p1949_p8), %s1624_s24, 1024  }
 0x2b9   : > { %2119 = vsyncadd (%p1949_p8), %s1624_s24, 4294966272  ;;  %p19_p9 = scmp.ge.s32.totalorder %s2208_s11, 4   ;;  %s3249_s27 = smov %s2126_s28 }
 0x2ba   : > { %s3250_s28 = smov %s2130_s29  ;;  %s3251_s29 = smov %s2219_s14 }
 0x2bb   : > { %s3252_s30 = smov %s2208_s11  ;;  %21 = sbr.rel (!%p19_p9) target bundleno = 3 (0x3), region = 107 }
 0x2c0   :  { %1638 = vsyncpa [#allocation3], 1 }
 0x2c1   :  { %1640 = vsyncpa [#allocation3 + $0x1], 1 }

</bundles_post_ra>
